<compile_context>
chip_gen: v6e
topology: v6e:2x2x1
jax: 0.10.0
libtpu: 0.0.40
codegen_flags: <defaults>
</compile_context>

<pallas_src>
import jax
import jax.numpy as jnp
from jax import lax
from jax.experimental import pallas as pl
from jax.experimental.pallas import tpu as pltpu

NBCLASS = 8   # LSTM hidden size == number of classes in the original module
LANE = 128    # TPU lane width; each gate is padded to one full lane block


def _lstm_recurrence_kernel(gx_ref, whh_ref, o_ref, h_ref, c_ref):
    """Serial LSTM recurrence over one time-block.

    gx_ref  : (Tt, B, 4*Hp)  precomputed input projection + bias (gate-padded)
    whh_ref : (Hp, 4*Hp)     hidden->gates weights (gate-padded with zeros)
    o_ref   : (B, Hp)        output = h at the final time step (padded lanes 0)
    h_ref   : (B, Hp)        VMEM scratch, hidden state carried across grid
    c_ref   : (B, Hp)        VMEM scratch, cell state carried across grid
    """
    @pl.when(pl.program_id(0) == 0)
    def _():
        h_ref[...] = jnp.zeros_like(h_ref)
        c_ref[...] = jnp.zeros_like(c_ref)

    whh = whh_ref[...]
    Tt = gx_ref.shape[0]
    Hp = h_ref.shape[-1]

    def step(t, carry):
        h, c = carry
        # Only one small MXU matmul left on the serial critical path.
        gates = gx_ref[t] + jnp.dot(h, whh, preferred_element_type=jnp.float32)
        # One full-width sigmoid (EUP), lane-aligned 128-wide gate slices.
        sig = jax.nn.sigmoid(gates)
        i_g = sig[:, 0 * Hp:1 * Hp]
        f_g = sig[:, 1 * Hp:2 * Hp]
        o_g = sig[:, 3 * Hp:4 * Hp]
        g_g = jnp.tanh(gates[:, 2 * Hp:3 * Hp])
        c_new = f_g * c + i_g * g_g
        h_new = o_g * jnp.tanh(c_new)
        return (h_new, c_new)

    unroll = Tt if Tt <= 16 else 8
    h, c = lax.fori_loop(0, Tt, step, (h_ref[...], c_ref[...]), unroll=unroll)
    h_ref[...] = h
    c_ref[...] = c
    o_ref[...] = h.astype(o_ref.dtype)   # final grid step's value is what lands in HBM


def _pad_gates(w, H, Hp):
    """(rows, 4*H) -> (rows, 4*Hp), zero-padding each gate block to Hp lanes."""
    rows = w.shape[0]
    w4 = w.reshape(rows, 4, H)
    w4 = jnp.pad(w4, ((0, 0), (0, 0), (0, Hp - H)))
    return w4.reshape(rows, 4 * Hp)


def lstm_head_forward(x, w_ih, w_hh, b_ih, b_hh):
    """x: (Nvideos, Nfeats, NFrames) -> (Nvideos, NBCLASS).

    Matches torch.nn.LSTM(batch_first=True), h0=c0=0, output at last frame.
    """
    B, F, T = x.shape
    H = w_hh.shape[1]
    assert w_ih.shape == (4 * H, F) and w_hh.shape == (4 * H, H)
    Hp = LANE

    # ---- glue (plain JAX): layout, gate-padding, hoisted input projection ----
    x_tmaj = jnp.transpose(x, (2, 0, 1)).astype(jnp.float32)             # (T, B, F)
    wih_p = _pad_gates(jnp.transpose(w_ih).astype(jnp.float32), H, Hp)   # (F, 4Hp)
    whh_p = _pad_gates(jnp.transpose(w_hh).astype(jnp.float32), H, Hp)   # (H, 4Hp)
    whh_p = jnp.pad(whh_p, ((0, Hp - H), (0, 0)))                        # (Hp, 4Hp)
    bias_p = _pad_gates((b_ih + b_hh).astype(jnp.float32).reshape(1, 4 * H), H, Hp)

    # Hoisted input projection + bias: one large matmul over all timesteps
    # instead of T tiny matmuls inside the serial recurrence.
    # TODO(synk): for large production F, cast x/wih to bfloat16 here (keep f32 accum).
    gates_x = jnp.einsum('tbf,fg->tbg', x_tmaj, wih_p,
                         preferred_element_type=jnp.float32) + bias_p    # (T, B, 4Hp)

    # Time-blocking: grid axis is the (serial) recurrence -> "arbitrary";
    # gates_x blocks are pipelined HBM->VMEM while the recurrence runs.
    t_block = T
    for cand in (256, 128, 64, 32, 16, 8):
        if T % cand == 0:
            t_block = cand
            break
    grid = (T // t_block,)

    out_p = pl.pallas_call(
        _lstm_recurrence_kernel,
        out_shape=jax.ShapeDtypeStruct((B, Hp), jnp.float32),
        grid_spec=pltpu.PrefetchScalarGridSpec(
            num_scalar_prefetch=0,
            grid=grid,
            in_specs=[
                pl.BlockSpec((t_block, B, 4 * Hp), lambda t: (t, 0, 0)),
                pl.BlockSpec((Hp, 4 * Hp), lambda t: (0, 0)),
            ],
            out_specs=pl.BlockSpec((B, Hp), lambda t: (0, 0)),
            scratch_shapes=[pltpu.VMEM((B, Hp), jnp.float32),
                            pltpu.VMEM((B, Hp), jnp.float32)],
        ),
        compiler_params=pltpu.CompilerParams(
            dimension_semantics=("arbitrary",),
            vmem_limit_bytes=48 << 20,   # safe under v7x's 64 MiB physical VMEM
        ),
    )(gates_x, whh_p)

    return out_p[:, :H]   # drop padded hidden lanes -> (Nvideos, NBCLASS)


def _reference_lstm(x, w_ih, w_hh, b_ih, b_hh):
    """Pure-JAX reference matching torch.nn.LSTM semantics (last-step output)."""
    B, F, T = x.shape
    H = w_hh.shape[1]
    xt = jnp.transpose(x, (2, 0, 1)).astype(jnp.float32)  # (T, B, F)
    h = jnp.zeros((B, H), jnp.float32)
    c = jnp.zeros((B, H), jnp.float32)
    for t in range(T):
        g = xt[t] @ w_ih.T + h @ w_hh.T + b_ih + b_hh
        i = jax.nn.sigmoid(g[:, 0 * H:1 * H])
        f = jax.nn.sigmoid(g[:, 1 * H:2 * H])
        gg = jnp.tanh(g[:, 2 * H:3 * H])
        o = jax.nn.sigmoid(g[:, 3 * H:4 * H])
        c = f * c + i * gg
        h = o * jnp.tanh(c)
    return h


if __name__ == "__main__":
    # small shapes implied by forward(): (Nvideos, Nfeats, NFrames)
    Nvideos, Nfeats, NFrames = 2, 4, 8
    H = NBCLASS

    key = jax.random.PRNGKey(0)
    kx, k1, k2, k3, k4 = jax.random.split(key, 5)

    x = jax.random.normal(kx, (Nvideos, Nfeats, NFrames), dtype=jnp.float32)

    # deterministic parameter init, PyTorch-style U(-1/sqrt(H), 1/sqrt(H))
    bound = 1.0 / (H ** 0.5)
    w_ih = jax.random.uniform(k1, (4 * H, Nfeats), minval=-bound, maxval=bound)
    w_hh = jax.random.uniform(k2, (4 * H, H), minval=-bound, maxval=bound)
    b_ih = jax.random.uniform(k3, (4 * H,), minval=-bound, maxval=bound)
    b_hh = jax.random.uniform(k4, (4 * H,), minval=-bound, maxval=bound)

    out = lstm_head_forward(x, w_ih, w_hh, b_ih, b_hh)
    out = jax.block_until_ready(out)

    assert out.shape == (Nvideos, NBCLASS), out.shape

    ref = _reference_lstm(x, w_ih, w_hh, b_ih, b_hh)
    assert jnp.allclose(out, ref, atol=1e-5, rtol=1e-5), (out, ref)

    print("KERNEL_OK")
</pallas_src>

<mosaic_0001>
module attributes {stable_mosaic.version = 11 : i64} {
  func.func @_lstm_recurrence_kernel(%arg0: i32, %arg1: memref<8x2x512xf32, #tpu.memory_space<vmem>>, %arg2: memref<128x512xf32, #tpu.memory_space<vmem>>, %arg3: memref<2x128xf32, #tpu.memory_space<vmem>>, %arg4: memref<2x128xf32, #tpu.memory_space<vmem>>, %arg5: memref<2x128xf32, #tpu.memory_space<vmem>>) attributes {dimension_semantics = [#tpu.dimension_semantics<arbitrary>], iteration_bounds = array<i64: 1>, scalar_prefetch = 0 : i64, scratch_operands = 2 : i64, tpu.core_type = #tpu.core_type<tc>, window_params = [{transform_indices = @transform_0, window_bounds = array<i64: 8, 2, 512>}, {pipeline_mode = #tpu.pipeline_mode<synchronous>, transform_indices = @transform_1, window_bounds = array<i64: 128, 512>}, {pipeline_mode = #tpu.pipeline_mode<synchronous>, transform_indices = @transform_2, window_bounds = array<i64: 2, 128>}]} {
    %c0_i32 = arith.constant 0 : i32
    %0 = arith.cmpi eq, %arg0, %c0_i32 : i32
    %1 = arith.extui %0 : i1 to i32
    %c0_i32_0 = arith.constant 0 : i32
    %2 = arith.cmpi ne, %1, %c0_i32_0 : i32
    scf.if %2 {
      %cst_44 = arith.constant 0.000000e+00 : f32
      %169 = vector.broadcast %cst_44 : f32 to vector<2x128xf32>
      %c0_45 = arith.constant 0 : index
      %c0_46 = arith.constant 0 : index
      %170 = vector.load %arg4[%c0_45, %c0_46] : memref<2x128xf32, #tpu.memory_space<vmem>>, vector<2x128xf32>
      tpu.vector_store %arg4[%c0_45, %c0_46], %169 {strides = array<i32>} : memref<2x128xf32, #tpu.memory_space<vmem>>, vector<2x128xf32>,
      %cst_47 = arith.constant 0.000000e+00 : f32
      %171 = vector.broadcast %cst_47 : f32 to vector<2x128xf32>
      %c0_48 = arith.constant 0 : index
      %c0_49 = arith.constant 0 : index
      %172 = vector.load %arg5[%c0_48, %c0_49] : memref<2x128xf32, #tpu.memory_space<vmem>>, vector<2x128xf32>
      tpu.vector_store %arg5[%c0_48, %c0_49], %171 {strides = array<i32>} : memref<2x128xf32, #tpu.memory_space<vmem>>, vector<2x128xf32>,
    } else {
    }
    %c0 = arith.constant 0 : index
    %c0_1 = arith.constant 0 : index
    %3 = vector.load %arg2[%c0, %c0_1] : memref<128x512xf32, #tpu.memory_space<vmem>>, vector<128x512xf32>
    %c0_2 = arith.constant 0 : index
    %c0_3 = arith.constant 0 : index
    %4 = vector.load %arg4[%c0_2, %c0_3] : memref<2x128xf32, #tpu.memory_space<vmem>>, vector<2x128xf32>
    %c0_4 = arith.constant 0 : index
    %c0_5 = arith.constant 0 : index
    %5 = vector.load %arg5[%c0_4, %c0_5] : memref<2x128xf32, #tpu.memory_space<vmem>>, vector<2x128xf32>
    %c0_i32_6 = arith.constant 0 : i32
    %6 = arith.index_cast %c0_i32_6 : i32 to index
    %c0_7 = arith.constant 0 : index
    %c0_8 = arith.constant 0 : index
    %7 = vector.load %arg1[%6, %c0_7, %c0_8] : memref<8x2x512xf32, #tpu.memory_space<vmem>>, vector<1x2x512xf32>
    %8 = vector.shape_cast %7 : vector<1x2x512xf32> to vector<2x512xf32>
    %cst = arith.constant dense<0.000000e+00> : vector<2x512xf32>
    %9 = tpu.matmul %4, %3, %cst {dimension_numbers = #tpu.dot_dimension_numbers<[1], [0], [0], [1], [0, 0, 1, 1], [], []>} : vector<2x128xf32>, vector<128x512xf32>, vector<2x512xf32> -> vector<2x512xf32>
    %10 = arith.addf %8, %9 : vector<2x512xf32>
    %11 = arith.negf %10 : vector<2x512xf32>
    %12 = math.exp %11 : vector<2x512xf32>
    %cst_9 = arith.constant 1.000000e+00 : f32
    %13 = vector.broadcast %cst_9 : f32 to vector<2x512xf32>
    %14 = arith.addf %13, %12 : vector<2x512xf32>
    %15 = arith.divf %13, %14 : vector<2x512xf32>
    %16 = vector.extract_strided_slice %15 {offsets = [0, 0], sizes = [2, 128], strides = [1, 1]} : vector<2x512xf32> to vector<2x128xf32>
    %17 = vector.extract_strided_slice %15 {offsets = [0, 128], sizes = [2, 128], strides = [1, 1]} : vector<2x512xf32> to vector<2x128xf32>
    %18 = vector.extract_strided_slice %15 {offsets = [0, 384], sizes = [2, 128], strides = [1, 1]} : vector<2x512xf32> to vector<2x128xf32>
    %19 = vector.extract_strided_slice %10 {offsets = [0, 256], sizes = [2, 128], strides = [1, 1]} : vector<2x512xf32> to vector<2x128xf32>
    %20 = math.tanh %19 : vector<2x128xf32>
    %21 = arith.mulf %17, %5 : vector<2x128xf32>
    %22 = arith.mulf %16, %20 : vector<2x128xf32>
    %23 = arith.addf %21, %22 : vector<2x128xf32>
    %24 = math.tanh %23 : vector<2x128xf32>
    %25 = arith.mulf %18, %24 : vector<2x128xf32>
    %c1_i32 = arith.constant 1 : i32
    %26 = arith.index_cast %c1_i32 : i32 to index
    %c0_10 = arith.constant 0 : index
    %c0_11 = arith.constant 0 : index
    %27 = vector.load %arg1[%26, %c0_10, %c0_11] : memref<8x2x512xf32, #tpu.memory_space<vmem>>, vector<1x2x512xf32>
    %28 = vector.shape_cast %27 : vector<1x2x512xf32> to vector<2x512xf32>
    %cst_12 = arith.constant dense<0.000000e+00> : vector<2x512xf32>
    %29 = tpu.matmul %25, %3, %cst_12 {dimension_numbers = #tpu.dot_dimension_numbers<[1], [0], [0], [1], [0, 0, 1, 1], [], []>} : vector<2x128xf32>, vector<128x512xf32>, vector<2x512xf32> -> vector<2x512xf32>
    %30 = arith.addf %28, %29 : vector<2x512xf32>
    %31 = arith.negf %30 : vector<2x512xf32>
    %32 = math.exp %31 : vector<2x512xf32>
    %cst_13 = arith.constant 1.000000e+00 : f32
    %33 = vector.broadcast %cst_13 : f32 to vector<2x512xf32>
    %34 = arith.addf %33, %32 : vector<2x512xf32>
    %35 = arith.divf %33, %34 : vector<2x512xf32>
    %36 = vector.extract_strided_slice %35 {offsets = [0, 0], sizes = [2, 128], strides = [1, 1]} : vector<2x512xf32> to vector<2x128xf32>
    %37 = vector.extract_strided_slice %35 {offsets = [0, 128], sizes = [2, 128], strides = [1, 1]} : vector<2x512xf32> to vector<2x128xf32>
    %38 = vector.extract_strided_slice %35 {offsets = [0, 384], sizes = [2, 128], strides = [1, 1]} : vector<2x512xf32> to vector<2x128xf32>
    %39 = vector.extract_strided_slice %30 {offsets = [0, 256], sizes = [2, 128], strides = [1, 1]} : vector<2x512xf32> to vector<2x128xf32>
    %40 = math.tanh %39 : vector<2x128xf32>
    %41 = arith.mulf %37, %23 : vector<2x128xf32>
    %42 = arith.mulf %36, %40 : vector<2x128xf32>
    %43 = arith.addf %41, %42 : vector<2x128xf32>
    %44 = math.tanh %43 : vector<2x128xf32>
    %45 = arith.mulf %38, %44 : vector<2x128xf32>
    %c2_i32 = arith.constant 2 : i32
    %46 = arith.index_cast %c2_i32 : i32 to index
    %c0_14 = arith.constant 0 : index
    %c0_15 = arith.constant 0 : index
    %47 = vector.load %arg1[%46, %c0_14, %c0_15] : memref<8x2x512xf32, #tpu.memory_space<vmem>>, vector<1x2x512xf32>
    %48 = vector.shape_cast %47 : vector<1x2x512xf32> to vector<2x512xf32>
    %cst_16 = arith.constant dense<0.000000e+00> : vector<2x512xf32>
    %49 = tpu.matmul %45, %3, %cst_16 {dimension_numbers = #tpu.dot_dimension_numbers<[1], [0], [0], [1], [0, 0, 1, 1], [], []>} : vector<2x128xf32>, vector<128x512xf32>, vector<2x512xf32> -> vector<2x512xf32>
    %50 = arith.addf %48, %49 : vector<2x512xf32>
    %51 = arith.negf %50 : vector<2x512xf32>
    %52 = math.exp %51 : vector<2x512xf32>
    %cst_17 = arith.constant 1.000000e+00 : f32
    %53 = vector.broadcast %cst_17 : f32 to vector<2x512xf32>
    %54 = arith.addf %53, %52 : vector<2x512xf32>
    %55 = arith.divf %53, %54 : vector<2x512xf32>
    %56 = vector.extract_strided_slice %55 {offsets = [0, 0], sizes = [2, 128], strides = [1, 1]} : vector<2x512xf32> to vector<2x128xf32>
    %57 = vector.extract_strided_slice %55 {offsets = [0, 128], sizes = [2, 128], strides = [1, 1]} : vector<2x512xf32> to vector<2x128xf32>
    %58 = vector.extract_strided_slice %55 {offsets = [0, 384], sizes = [2, 128], strides = [1, 1]} : vector<2x512xf32> to vector<2x128xf32>
    %59 = vector.extract_strided_slice %50 {offsets = [0, 256], sizes = [2, 128], strides = [1, 1]} : vector<2x512xf32> to vector<2x128xf32>
    %60 = math.tanh %59 : vector<2x128xf32>
    %61 = arith.mulf %57, %43 : vector<2x128xf32>
    %62 = arith.mulf %56, %60 : vector<2x128xf32>
    %63 = arith.addf %61, %62 : vector<2x128xf32>
    %64 = math.tanh %63 : vector<2x128xf32>
    %65 = arith.mulf %58, %64 : vector<2x128xf32>
    %c3_i32 = arith.constant 3 : i32
    %66 = arith.index_cast %c3_i32 : i32 to index
    %c0_18 = arith.constant 0 : index
    %c0_19 = arith.constant 0 : index
    %67 = vector.load %arg1[%66, %c0_18, %c0_19] : memref<8x2x512xf32, #tpu.memory_space<vmem>>, vector<1x2x512xf32>
    %68 = vector.shape_cast %67 : vector<1x2x512xf32> to vector<2x512xf32>
    %cst_20 = arith.constant dense<0.000000e+00> : vector<2x512xf32>
    %69 = tpu.matmul %65, %3, %cst_20 {dimension_numbers = #tpu.dot_dimension_numbers<[1], [0], [0], [1], [0, 0, 1, 1], [], []>} : vector<2x128xf32>, vector<128x512xf32>, vector<2x512xf32> -> vector<2x512xf32>
    %70 = arith.addf %68, %69 : vector<2x512xf32>
    %71 = arith.negf %70 : vector<2x512xf32>
    %72 = math.exp %71 : vector<2x512xf32>
    %cst_21 = arith.constant 1.000000e+00 : f32
    %73 = vector.broadcast %cst_21 : f32 to vector<2x512xf32>
    %74 = arith.addf %73, %72 : vector<2x512xf32>
    %75 = arith.divf %73, %74 : vector<2x512xf32>
    %76 = vector.extract_strided_slice %75 {offsets = [0, 0], sizes = [2, 128], strides = [1, 1]} : vector<2x512xf32> to vector<2x128xf32>
    %77 = vector.extract_strided_slice %75 {offsets = [0, 128], sizes = [2, 128], strides = [1, 1]} : vector<2x512xf32> to vector<2x128xf32>
    %78 = vector.extract_strided_slice %75 {offsets = [0, 384], sizes = [2, 128], strides = [1, 1]} : vector<2x512xf32> to vector<2x128xf32>
    %79 = vector.extract_strided_slice %70 {offsets = [0, 256], sizes = [2, 128], strides = [1, 1]} : vector<2x512xf32> to vector<2x128xf32>
    %80 = math.tanh %79 : vector<2x128xf32>
    %81 = arith.mulf %77, %63 : vector<2x128xf32>
    %82 = arith.mulf %76, %80 : vector<2x128xf32>
    %83 = arith.addf %81, %82 : vector<2x128xf32>
    %84 = math.tanh %83 : vector<2x128xf32>
    %85 = arith.mulf %78, %84 : vector<2x128xf32>
    %c4_i32 = arith.constant 4 : i32
    %86 = arith.index_cast %c4_i32 : i32 to index
    %c0_22 = arith.constant 0 : index
    %c0_23 = arith.constant 0 : index
    %87 = vector.load %arg1[%86, %c0_22, %c0_23] : memref<8x2x512xf32, #tpu.memory_space<vmem>>, vector<1x2x512xf32>
    %88 = vector.shape_cast %87 : vector<1x2x512xf32> to vector<2x512xf32>
    %cst_24 = arith.constant dense<0.000000e+00> : vector<2x512xf32>
    %89 = tpu.matmul %85, %3, %cst_24 {dimension_numbers = #tpu.dot_dimension_numbers<[1], [0], [0], [1], [0, 0, 1, 1], [], []>} : vector<2x128xf32>, vector<128x512xf32>, vector<2x512xf32> -> vector<2x512xf32>
    %90 = arith.addf %88, %89 : vector<2x512xf32>
    %91 = arith.negf %90 : vector<2x512xf32>
    %92 = math.exp %91 : vector<2x512xf32>
    %cst_25 = arith.constant 1.000000e+00 : f32
    %93 = vector.broadcast %cst_25 : f32 to vector<2x512xf32>
    %94 = arith.addf %93, %92 : vector<2x512xf32>
    %95 = arith.divf %93, %94 : vector<2x512xf32>
    %96 = vector.extract_strided_slice %95 {offsets = [0, 0], sizes = [2, 128], strides = [1, 1]} : vector<2x512xf32> to vector<2x128xf32>
    %97 = vector.extract_strided_slice %95 {offsets = [0, 128], sizes = [2, 128], strides = [1, 1]} : vector<2x512xf32> to vector<2x128xf32>
    %98 = vector.extract_strided_slice %95 {offsets = [0, 384], sizes = [2, 128], strides = [1, 1]} : vector<2x512xf32> to vector<2x128xf32>
    %99 = vector.extract_strided_slice %90 {offsets = [0, 256], sizes = [2, 128], strides = [1, 1]} : vector<2x512xf32> to vector<2x128xf32>
    %100 = math.tanh %99 : vector<2x128xf32>
    %101 = arith.mulf %97, %83 : vector<2x128xf32>
    %102 = arith.mulf %96, %100 : vector<2x128xf32>
    %103 = arith.addf %101, %102 : vector<2x128xf32>
    %104 = math.tanh %103 : vector<2x128xf32>
    %105 = arith.mulf %98, %104 : vector<2x128xf32>
    %c5_i32 = arith.constant 5 : i32
    %106 = arith.index_cast %c5_i32 : i32 to index
    %c0_26 = arith.constant 0 : index
    %c0_27 = arith.constant 0 : index
    %107 = vector.load %arg1[%106, %c0_26, %c0_27] : memref<8x2x512xf32, #tpu.memory_space<vmem>>, vector<1x2x512xf32>
    %108 = vector.shape_cast %107 : vector<1x2x512xf32> to vector<2x512xf32>
    %cst_28 = arith.constant dense<0.000000e+00> : vector<2x512xf32>
    %109 = tpu.matmul %105, %3, %cst_28 {dimension_numbers = #tpu.dot_dimension_numbers<[1], [0], [0], [1], [0, 0, 1, 1], [], []>} : vector<2x128xf32>, vector<128x512xf32>, vector<2x512xf32> -> vector<2x512xf32>
    %110 = arith.addf %108, %109 : vector<2x512xf32>
    %111 = arith.negf %110 : vector<2x512xf32>
    %112 = math.exp %111 : vector<2x512xf32>
    %cst_29 = arith.constant 1.000000e+00 : f32
    %113 = vector.broadcast %cst_29 : f32 to vector<2x512xf32>
    %114 = arith.addf %113, %112 : vector<2x512xf32>
    %115 = arith.divf %113, %114 : vector<2x512xf32>
    %116 = vector.extract_strided_slice %115 {offsets = [0, 0], sizes = [2, 128], strides = [1, 1]} : vector<2x512xf32> to vector<2x128xf32>
    %117 = vector.extract_strided_slice %115 {offsets = [0, 128], sizes = [2, 128], strides = [1, 1]} : vector<2x512xf32> to vector<2x128xf32>
    %118 = vector.extract_strided_slice %115 {offsets = [0, 384], sizes = [2, 128], strides = [1, 1]} : vector<2x512xf32> to vector<2x128xf32>
    %119 = vector.extract_strided_slice %110 {offsets = [0, 256], sizes = [2, 128], strides = [1, 1]} : vector<2x512xf32> to vector<2x128xf32>
    %120 = math.tanh %119 : vector<2x128xf32>
    %121 = arith.mulf %117, %103 : vector<2x128xf32>
    %122 = arith.mulf %116, %120 : vector<2x128xf32>
    %123 = arith.addf %121, %122 : vector<2x128xf32>
    %124 = math.tanh %123 : vector<2x128xf32>
    %125 = arith.mulf %118, %124 : vector<2x128xf32>
    %c6_i32 = arith.constant 6 : i32
    %126 = arith.index_cast %c6_i32 : i32 to index
    %c0_30 = arith.constant 0 : index
    %c0_31 = arith.constant 0 : index
    %127 = vector.load %arg1[%126, %c0_30, %c0_31] : memref<8x2x512xf32, #tpu.memory_space<vmem>>, vector<1x2x512xf32>
    %128 = vector.shape_cast %127 : vector<1x2x512xf32> to vector<2x512xf32>
    %cst_32 = arith.constant dense<0.000000e+00> : vector<2x512xf32>
    %129 = tpu.matmul %125, %3, %cst_32 {dimension_numbers = #tpu.dot_dimension_numbers<[1], [0], [0], [1], [0, 0, 1, 1], [], []>} : vector<2x128xf32>, vector<128x512xf32>, vector<2x512xf32> -> vector<2x512xf32>
    %130 = arith.addf %128, %129 : vector<2x512xf32>
    %131 = arith.negf %130 : vector<2x512xf32>
    %132 = math.exp %131 : vector<2x512xf32>
    %cst_33 = arith.constant 1.000000e+00 : f32
    %133 = vector.broadcast %cst_33 : f32 to vector<2x512xf32>
    %134 = arith.addf %133, %132 : vector<2x512xf32>
    %135 = arith.divf %133, %134 : vector<2x512xf32>
    %136 = vector.extract_strided_slice %135 {offsets = [0, 0], sizes = [2, 128], strides = [1, 1]} : vector<2x512xf32> to vector<2x128xf32>
    %137 = vector.extract_strided_slice %135 {offsets = [0, 128], sizes = [2, 128], strides = [1, 1]} : vector<2x512xf32> to vector<2x128xf32>
    %138 = vector.extract_strided_slice %135 {offsets = [0, 384], sizes = [2, 128], strides = [1, 1]} : vector<2x512xf32> to vector<2x128xf32>
    %139 = vector.extract_strided_slice %130 {offsets = [0, 256], sizes = [2, 128], strides = [1, 1]} : vector<2x512xf32> to vector<2x128xf32>
    %140 = math.tanh %139 : vector<2x128xf32>
    %141 = arith.mulf %137, %123 : vector<2x128xf32>
    %142 = arith.mulf %136, %140 : vector<2x128xf32>
    %143 = arith.addf %141, %142 : vector<2x128xf32>
    %144 = math.tanh %143 : vector<2x128xf32>
    %145 = arith.mulf %138, %144 : vector<2x128xf32>
    %c7_i32 = arith.constant 7 : i32
    %146 = arith.index_cast %c7_i32 : i32 to index
    %c0_34 = arith.constant 0 : index
    %c0_35 = arith.constant 0 : index
    %147 = vector.load %arg1[%146, %c0_34, %c0_35] : memref<8x2x512xf32, #tpu.memory_space<vmem>>, vector<1x2x512xf32>
    %148 = vector.shape_cast %147 : vector<1x2x512xf32> to vector<2x512xf32>
    %cst_36 = arith.constant dense<0.000000e+00> : vector<2x512xf32>
    %149 = tpu.matmul %145, %3, %cst_36 {dimension_numbers = #tpu.dot_dimension_numbers<[1], [0], [0], [1], [0, 0, 1, 1], [], []>} : vector<2x128xf32>, vector<128x512xf32>, vector<2x512xf32> -> vector<2x512xf32>
    %150 = arith.addf %148, %149 : vector<2x512xf32>
    %151 = arith.negf %150 : vector<2x512xf32>
    %152 = math.exp %151 : vector<2x512xf32>
    %cst_37 = arith.constant 1.000000e+00 : f32
    %153 = vector.broadcast %cst_37 : f32 to vector<2x512xf32>
    %154 = arith.addf %153, %152 : vector<2x512xf32>
    %155 = arith.divf %153, %154 : vector<2x512xf32>
    %156 = vector.extract_strided_slice %155 {offsets = [0, 0], sizes = [2, 128], strides = [1, 1]} : vector<2x512xf32> to vector<2x128xf32>
    %157 = vector.extract_strided_slice %155 {offsets = [0, 128], sizes = [2, 128], strides = [1, 1]} : vector<2x512xf32> to vector<2x128xf32>
    %158 = vector.extract_strided_slice %155 {offsets = [0, 384], sizes = [2, 128], strides = [1, 1]} : vector<2x512xf32> to vector<2x128xf32>
    %159 = vector.extract_strided_slice %150 {offsets = [0, 256], sizes = [2, 128], strides = [1, 1]} : vector<2x512xf32> to vector<2x128xf32>
    %160 = math.tanh %159 : vector<2x128xf32>
    %161 = arith.mulf %157, %143 : vector<2x128xf32>
    %162 = arith.mulf %156, %160 : vector<2x128xf32>
    %163 = arith.addf %161, %162 : vector<2x128xf32>
    %164 = math.tanh %163 : vector<2x128xf32>
    %165 = arith.mulf %158, %164 : vector<2x128xf32>
    %c8_i32 = arith.constant 8 : i32
    %c0_38 = arith.constant 0 : index
    %c0_39 = arith.constant 0 : index
    %166 = vector.load %arg4[%c0_38, %c0_39] : memref<2x128xf32, #tpu.memory_space<vmem>>, vector<2x128xf32>
    tpu.vector_store %arg4[%c0_38, %c0_39], %165 {strides = array<i32>} : memref<2x128xf32, #tpu.memory_space<vmem>>, vector<2x128xf32>,
    %c0_40 = arith.constant 0 : index
    %c0_41 = arith.constant 0 : index
    %167 = vector.load %arg5[%c0_40, %c0_41] : memref<2x128xf32, #tpu.memory_space<vmem>>, vector<2x128xf32>
    tpu.vector_store %arg5[%c0_40, %c0_41], %163 {strides = array<i32>} : memref<2x128xf32, #tpu.memory_space<vmem>>, vector<2x128xf32>,
    %c0_42 = arith.constant 0 : index
    %c0_43 = arith.constant 0 : index
    %168 = vector.load %arg3[%c0_42, %c0_43] : memref<2x128xf32, #tpu.memory_space<vmem>>, vector<2x128xf32>
    tpu.vector_store %arg3[%c0_42, %c0_43], %165 {strides = array<i32>} : memref<2x128xf32, #tpu.memory_space<vmem>>, vector<2x128xf32>,
    return
  }
  func.func @transform_0(%arg0: i32) -> (i32, i32, i32) {
    %c0_i32 = arith.constant 0 : i32
    %c0_i32_0 = arith.constant 0 : i32
    %c0_i32_1 = arith.constant 0 : i32
    return %arg0, %c0_i32, %c0_i32_0 : i32, i32, i32
  }
  func.func @transform_1(%arg0: i32) -> (i32, i32) {
    %c0_i32 = arith.constant 0 : i32
    %c0_i32_0 = arith.constant 0 : i32
    %c0_i32_1 = arith.constant 0 : i32
    return %c0_i32, %c0_i32_0 : i32, i32
  }
  func.func @transform_2(%arg0: i32) -> (i32, i32) {
    %c0_i32 = arith.constant 0 : i32
    %c0_i32_0 = arith.constant 0 : i32
    %c0_i32_1 = arith.constant 0 : i32
    return %c0_i32, %c0_i32_0 : i32, i32
  }
}

</mosaic_0001>

<bundles_post_ra>
// kernel: tpu_custom_call.1
= control target key start
LH: loop header
LB: loop body
LE: loop exit
PB: predicated region body
PF: predicated region fallthrough
CT: control target
= control target key end

     0   :  { %7 = vsyncpa [#allocation5], 0  ;;  %s2698_s0 = inlined_call_operand.hbm [shape: f32[8,2,512], index: 0, kind: input, shape index: {}]   ;;  %s2699_s1 = inlined_call_operand.hbm [shape: f32[128,512], index: 1, kind: input, shape index: {}]   ;;  %s2700_s2 = inlined_call_operand.hbm [shape: f32[2,128], index: 2, kind: output, shape index: {}]  }
   0x1   :  { %8 = vsyncpa [#allocation8], 0 }
   0x2   :  { %9 = vsyncpa [#allocation6], 0  ;;  %s1837_s9 = smov [#allocation4]  }
   0x3   :  { %s15_s10 = sshll.u32 %s1837_s9, 4  ;;  %s16_s10 = int_to_ptr.vmem [resolvable:$true] %s15_s10 }
   0x4   :  { %s1779_s11 = scalar_lea.vmem %s16_s10, 1024  ;;  %p1784_p1 = scmp.lt.s32.totalorder %s16_s10, %s16_s10 }
   0x5   :  { %p1780_p0 = scmp.ne.s32.totalorder %s16_s10, %s1779_s11  ;;  %p1785_p2 = scmp.lt.s32.totalorder %s1779_s11, %s1779_s11 }
   0x7   :  { %p1786_p3 = por %p1785_p2, %p1784_p1 }
   0x9   :  { %p1787_p4 = pnand %p1786_p3, %p1780_p0 }
   0xb   :  { %1790 = shalt.err (!%p1787_p4)
}
   0xc   :  { %s1838_s12 = smov 128   ;;  %s1839_s13 = smov 8  }
   0xd   :  { %21 = dma.hbm_to_vmem [thread:$0]  %s2698_s0, 1024, %s16_s10, [#allocation5], %s1838_s12, %s1838_s12, %s1839_s13  }
   0xe   :  { %s1840_s16 = smov [#allocation7]  }
   0xf   :  { %s27_s17 = sshll.u32 %s1840_s16, 4  ;;  %s28_s17 = int_to_ptr.vmem [resolvable:$true] %s27_s17 }
  0x10   :  { %s1799_s18 = scalar_lea.vmem %s28_s17, 8192  ;;  %p1804_p6 = scmp.lt.s32.totalorder %s28_s17, %s28_s17 }
  0x11   :  { %p1800_p5 = scmp.ne.s32.totalorder %s28_s17, %s1799_s18  ;;  %p1805_p7 = scmp.lt.s32.totalorder %s1799_s18, %s1799_s18 }
  0x13   :  { %p1806_p8 = por %p1805_p7, %p1804_p6 }
  0x15   :  { %p1807_p9 = pnand %p1806_p8, %p1800_p5 }
  0x17   :  { %1810 = shalt.err (!%p1807_p9)
}
  0x18   :  { %s1841_s19 = smov 512   ;;  %s1842_s20 = smov 32  }
  0x19   :  { %33 = dma.hbm_to_vmem [thread:$0]  %s2699_s1, 8192, %s28_s17, [#allocation8], %s1841_s19, %s1841_s19, %s1842_s20  }
  0x1a   :  { %1831 = dma.done.wait [#allocation5], 1024  }
  0x1b   :  { %1832 = vsyncadd [#allocation5], 4294966272 }
  0x1c   :  { %1833 = dma.done.wait [#allocation8], 8192  }
  0x1d   :  { %1834 = vsyncadd [#allocation8], 4294959104  ;;  %v2701_v0 = vmov 0.0   ;;  %v1871_v1 = vld [vmem:[#allocation7 + $0x1e8] sm:$0xff]  ;;  %v1873_v2 = vld [vmem:[#allocation7 + $0x1f8] sm:$0xff]  ;;  %s1845_s0 = smov [#allocation9]  }
  0x1e   :  { %177 = vmatprep.mubr.f32.mxu0 %v2701_v0  ;;  %44 = vst [vmem:[#allocation2] sm:$0x3] %v2701_v0  ;;  %45 = vst [vmem:[#allocation3] sm:$0x3] %v2701_v0  ;;  %248 = vmatprep.mubr.f32.mxu1 %v2701_v0  ;;  %v1875_v3 = vld [vmem:[#allocation7 + $0x1e0] sm:$0xff]  ;;  %v1879_v4 = vld [vmem:[#allocation7 + $0x1f0] sm:$0xff] }
  0x1f   :  { %2769 = vst [vmem:[#allocation13_spill] sm:$0xff] %v1871_v1  ;;  %2770 = vst [vmem:[#allocation14_spill] sm:$0xff] %v1873_v2  ;;  %113 = vmatprep.subr.mxu0 %v1871_v1  ;;  %184 = vmatprep.subr.mxu1 %v1873_v2  ;;  %v1881_v5 = vld [vmem:[#allocation7 + $0x1c8] sm:$0xff]  ;;  %v1883_v6 = vld [vmem:[#allocation7 + $0x1d8] sm:$0xff]  ;;  %s1616_s1 = sshll.u32 %s1845_s0, 4  ;;  %s1617_s1 = int_to_ptr.vmem [resolvable:$true] %s1616_s1 }
  0x20   :  { %114 = vmatpush1.msra.mxu0 %v1875_v3  ;;  %185 = vmatpush1.msra.mxu1 %v1879_v4  ;;  %v1887_v7 = vld [vmem:[#allocation7 + $0x1c0] sm:$0xff]  ;;  %v1889_v8 = vld [vmem:[#allocation7 + $0x1d0] sm:$0xff]  ;;  %v1891_v9 = vld [vmem:[#allocation7 + $0x1a8] sm:$0xff]  ;;  %s1811_s23 = scalar_lea.vmem %s1617_s1, 32  ;;  %p1816_p11 = scmp.lt.s32.totalorder %s1617_s1, %s1617_s1 }
  0x21   :  { %115 = vmatprep.subr.mxu0 %v1881_v5  ;;  %186 = vmatprep.subr.mxu1 %v1883_v6  ;;  %v1895_v10 = vld [vmem:[#allocation7 + $0x1b8] sm:$0xff]  ;;  %v1897_v11 = vld [vmem:[#allocation7 + $0x1a0] sm:$0xff]  ;;  %v1899_v12 = vld [vmem:[#allocation7 + $0x1b0] sm:$0xff]  ;;  %p1812_p10 = scmp.ne.s32.totalorder %s1617_s1, %s1811_s23  ;;  %p1817_p12 = scmp.lt.s32.totalorder %s1811_s23, %s1811_s23 }
  0x22   :  { %116 = vmatpush1.msra.mxu0 %v1887_v7  ;;  %187 = vmatpush1.msra.mxu1 %v1889_v8  ;;  %v1903_v13 = vld [vmem:[#allocation7 + $0x188] sm:$0xff]  ;;  %v1905_v14 = vld [vmem:[#allocation7 + $0x198] sm:$0xff]  ;;  %v1909_v15 = vld [vmem:[#allocation7 + $0x180] sm:$0xff] }
  0x23   :  { %117 = vmatprep.subr.mxu0 %v1891_v9  ;;  %188 = vmatprep.subr.mxu1 %v1895_v10  ;;  %v1911_v16 = vld [vmem:[#allocation7 + $0x190] sm:$0xff]  ;;  %v1915_v17 = vld [vmem:[#allocation7 + $0x168] sm:$0xff]  ;;  %v1917_v18 = vld [vmem:[#allocation7 + $0x178] sm:$0xff]  ;;  %p1818_p13 = por %p1817_p12, %p1816_p11 }
  0x24   :  { %118 = vmatpush1.msra.mxu0 %v1897_v11  ;;  %189 = vmatpush1.msra.mxu1 %v1899_v12  ;;  %v1921_v19 = vld [vmem:[#allocation7 + $0x160] sm:$0xff]  ;;  %v1923_v20 = vld [vmem:[#allocation7 + $0x170] sm:$0xff]  ;;  %v1927_v21 = vld [vmem:[#allocation7 + $0x148] sm:$0xff] }
  0x25   :  { %119 = vmatprep.subr.mxu0 %v1903_v13  ;;  %190 = vmatprep.subr.mxu1 %v1905_v14  ;;  %v1929_v22 = vld [vmem:[#allocation7 + $0x158] sm:$0xff]  ;;  %v1933_v23 = vld [vmem:[#allocation7 + $0x140] sm:$0xff]  ;;  %v1935_v24 = vld [vmem:[#allocation7 + $0x150] sm:$0xff]  ;;  %p1819_p0 = pnand %p1818_p13, %p1812_p10 }
  0x26   :  { %120 = vmatpush1.msra.mxu0 %v1909_v15  ;;  %191 = vmatpush1.msra.mxu1 %v1911_v16  ;;  %v1939_v25 = vld [vmem:[#allocation7 + $0x128] sm:$0xff]  ;;  %v1941_v26 = vld [vmem:[#allocation7 + $0x138] sm:$0xff]  ;;  %v1945_v27 = vld [vmem:[#allocation7 + $0x120] sm:$0xff] }
  0x27   :  { %121 = vmatprep.subr.mxu0 %v1915_v17  ;;  %192 = vmatprep.subr.mxu1 %v1917_v18  ;;  %v1947_v28 = vld [vmem:[#allocation7 + $0x130] sm:$0xff]  ;;  %v1951_v29 = vld [vmem:[#allocation7 + $0x108] sm:$0xff]  ;;  %v1953_v30 = vld [vmem:[#allocation7 + $0x118] sm:$0xff] }
  0x28   :  { %122 = vmatpush1.msra.mxu0 %v1921_v19  ;;  %193 = vmatpush1.msra.mxu1 %v1923_v20  ;;  %v1957_v31 = vld [vmem:[#allocation7 + $0x100] sm:$0xff]  ;;  %v1959_v32 = vld [vmem:[#allocation7 + $0x110] sm:$0xff]  ;;  %v1963_v33 = vld [vmem:[#allocation7 + $0xe8] sm:$0xff] }
  0x29   :  { %123 = vmatprep.subr.mxu0 %v1927_v21  ;;  %194 = vmatprep.subr.mxu1 %v1929_v22  ;;  %v1965_v34 = vld [vmem:[#allocation7 + $0xf8] sm:$0xff]  ;;  %v1969_v35 = vld [vmem:[#allocation7 + $0xe0] sm:$0xff]  ;;  %v1971_v36 = vld [vmem:[#allocation7 + $0xf0] sm:$0xff] }
  0x2a   :  { %124 = vmatpush1.msra.mxu0 %v1933_v23  ;;  %195 = vmatpush1.msra.mxu1 %v1935_v24  ;;  %v1975_v37 = vld [vmem:[#allocation7 + $0xc8] sm:$0xff]  ;;  %v1977_v38 = vld [vmem:[#allocation7 + $0xd8] sm:$0xff]  ;;  %v1981_v39 = vld [vmem:[#allocation7 + $0xc0] sm:$0xff] }
  0x2b   :  { %125 = vmatprep.subr.mxu0 %v1939_v25  ;;  %196 = vmatprep.subr.mxu1 %v1941_v26  ;;  %v1983_v40 = vld [vmem:[#allocation7 + $0xd0] sm:$0xff]  ;;  %v1987_v41 = vld [vmem:[#allocation7 + $0xa8] sm:$0xff]  ;;  %v1989_v42 = vld [vmem:[#allocation7 + $0xb8] sm:$0xff] }
  0x2c   :  { %126 = vmatpush1.msra.mxu0 %v1945_v27  ;;  %197 = vmatpush1.msra.mxu1 %v1947_v28  ;;  %v1993_v43 = vld [vmem:[#allocation7 + $0xa0] sm:$0xff]  ;;  %v1995_v44 = vld [vmem:[#allocation7 + $0xb0] sm:$0xff]  ;;  %v1999_v45 = vld [vmem:[#allocation7 + $0x88] sm:$0xff] }
  0x2d   :  { %127 = vmatprep.subr.mxu0 %v1951_v29  ;;  %198 = vmatprep.subr.mxu1 %v1953_v30  ;;  %v2001_v46 = vld [vmem:[#allocation7 + $0x98] sm:$0xff]  ;;  %v2005_v47 = vld [vmem:[#allocation7 + $0x80] sm:$0xff]  ;;  %v2007_v48 = vld [vmem:[#allocation7 + $0x90] sm:$0xff] }
  0x2e   :  { %128 = vmatpush1.msra.mxu0 %v1957_v31  ;;  %199 = vmatpush1.msra.mxu1 %v1959_v32  ;;  %2771 = vst [vmem:[#allocation15_spill] sm:$0xff] %v2001_v46  ;;  %2772 = vst [vmem:[#allocation16_spill] sm:$0xff] %v2005_v47  ;;  %v2011_v49 = vld [vmem:[#allocation7 + $0x68] sm:$0xff]  ;;  %v2013_v50 = vld [vmem:[#allocation7 + $0x78] sm:$0xff] }
  0x2f   :  { %129 = vmatprep.subr.mxu0 %v1963_v33  ;;  %200 = vmatprep.subr.mxu1 %v1965_v34  ;;  %2773 = vst [vmem:[#allocation17_spill] sm:$0xff] %v2007_v48  ;;  %2774 = vst [vmem:[#allocation18_spill] sm:$0xff] %v2011_v49  ;;  %v2017_v51 = vld [vmem:[#allocation7 + $0x60] sm:$0xff]  ;;  %v2019_v52 = vld [vmem:[#allocation7 + $0x70] sm:$0xff] }
  0x30   :  { %130 = vmatpush1.msra.mxu0 %v1969_v35  ;;  %201 = vmatpush1.msra.mxu1 %v1971_v36  ;;  %2775 = vst [vmem:[#allocation19_spill] sm:$0xff] %v2013_v50  ;;  %2776 = vst [vmem:[#allocation20_spill] sm:$0xff] %v2017_v51  ;;  %v2023_v53 = vld [vmem:[#allocation7 + $0x48] sm:$0xff]  ;;  %v2025_v54 = vld [vmem:[#allocation7 + $0x58] sm:$0xff] }
  0x31   :  { %131 = vmatprep.subr.mxu0 %v1975_v37  ;;  %202 = vmatprep.subr.mxu1 %v1977_v38  ;;  %2777 = vst [vmem:[#allocation21_spill] sm:$0xff] %v2019_v52  ;;  %2778 = vst [vmem:[#allocation22_spill] sm:$0xff] %v2023_v53  ;;  %v2029_v55 = vld [vmem:[#allocation7 + $0x40] sm:$0xff]  ;;  %v2031_v56 = vld [vmem:[#allocation7 + $0x50] sm:$0xff] }
  0x32   :  { %132 = vmatpush1.msra.mxu0 %v1981_v39  ;;  %203 = vmatpush1.msra.mxu1 %v1983_v40  ;;  %2779 = vst [vmem:[#allocation23_spill] sm:$0xff] %v2025_v54  ;;  %2780 = vst [vmem:[#allocation24_spill] sm:$0xff] %v2029_v55  ;;  %v2035_v57 = vld [vmem:[#allocation7 + $0x28] sm:$0xff]  ;;  %v2037_v58 = vld [vmem:[#allocation7 + $0x38] sm:$0xff] }
  0x33   :  { %133 = vmatprep.subr.mxu0 %v1987_v41  ;;  %204 = vmatprep.subr.mxu1 %v1989_v42  ;;  %2781 = vst [vmem:[#allocation25_spill] sm:$0xff] %v2031_v56  ;;  %2782 = vst [vmem:[#allocation26_spill] sm:$0xff] %v2035_v57  ;;  %v2041_v59 = vld [vmem:[#allocation7 + $0x20] sm:$0xff]  ;;  %v2043_v60 = vld [vmem:[#allocation7 + $0x30] sm:$0xff] }
  0x34   :  { %134 = vmatpush1.msra.mxu0 %v1993_v43  ;;  %205 = vmatpush1.msra.mxu1 %v1995_v44  ;;  %2783 = vst [vmem:[#allocation27_spill] sm:$0xff] %v2037_v58  ;;  %2784 = vst [vmem:[#allocation28_spill] sm:$0xff] %v2041_v59  ;;  %v2047_v61 = vld [vmem:[#allocation7 + $0x8] sm:$0xff]  ;;  %v2049_v62 = vld [vmem:[#allocation7 + $0x18] sm:$0xff] }
  0x35   :  { %135 = vmatprep.subr.mxu0 %v1999_v45  ;;  %206 = vmatprep.subr.mxu1 %v2001_v46  ;;  %2785 = vst [vmem:[#allocation29_spill] sm:$0xff] %v2043_v60  ;;  %2786 = vst [vmem:[#allocation30_spill] sm:$0xff] %v2047_v61  ;;  %v2053_v63 = vld [vmem:[#allocation7] sm:$0xff]  ;;  %v2055_v0 = vld [vmem:[#allocation7 + $0x10] sm:$0xff] }
  0x36   :  { %136 = vmatpush1.msra.mxu0 %v2005_v47  ;;  %207 = vmatpush1.msra.mxu1 %v2007_v48  ;;  %2787 = vst [vmem:[#allocation31_spill] sm:$0xff] %v2049_v62  ;;  %2788 = vst [vmem:[#allocation32_spill] sm:$0xff] %v2053_v63 }
  0x37   :  { %137 = vmatprep.subr.mxu0 %v2011_v49  ;;  %208 = vmatprep.subr.mxu1 %v2013_v50  ;;  %2789 = vst [vmem:[#allocation33_spill] sm:$0xff] %v2055_v0 }
  0x38   :  { %138 = vmatpush1.msra.mxu0 %v2017_v51  ;;  %209 = vmatpush1.msra.mxu1 %v2019_v52 }
  0x39   :  { %139 = vmatprep.subr.mxu0 %v2023_v53  ;;  %210 = vmatprep.subr.mxu1 %v2025_v54  ;;  %v110_v54 = vld [vmem:[#allocation2] sm:$0x3] }
  0x3a   :  { %140 = vmatpush1.msra.mxu0 %v2029_v55  ;;  %211 = vmatpush1.msra.mxu1 %v2031_v56 }
  0x3b   :  { %141 = vmatprep.subr.mxu0 %v2035_v57  ;;  %212 = vmatprep.subr.mxu1 %v2037_v58 }
  0x3c   :  { %142 = vmatpush1.msra.mxu0 %v2041_v59  ;;  %213 = vmatpush1.msra.mxu1 %v2043_v60 }
  0x3d   :  { %143 = vmatprep.subr.mxu0 %v2047_v61  ;;  %214 = vmatprep.subr.mxu1 %v2049_v62 }
  0x3e   :  { %144 = vmatpush1.msra.mxu0 %v2053_v63  ;;  %215 = vmatpush1.msra.mxu1 %v2055_v0 }
  0x3f   :  { %178 = vmatmul.mubr.f32.vlgmr.msra.gmra.mxu0 %v110_v54  ;;  %249 = vmatmul.mubr.f32.vlgmr.msra.gmra.mxu1 %v110_v54  ;;  %v2790_v54 = vld [vmem:[#allocation23_spill] sm:$0xff] }
  0x40   :  { %300 = vmatprep.subr.mxu0 %v1871_v1  ;;  %371 = vmatprep.subr.mxu1 %v1873_v2 }
  0x41   :  { %301 = vmatpush1.msra.mxu0 %v1875_v3  ;;  %372 = vmatpush1.msra.mxu1 %v1879_v4 }
  0x42   :  { %302 = vmatprep.subr.mxu0 %v1881_v5  ;;  %373 = vmatprep.subr.mxu1 %v1883_v6 }
  0x43   :  { %303 = vmatpush1.msra.mxu0 %v1887_v7  ;;  %374 = vmatpush1.msra.mxu1 %v1889_v8 }
  0x44   :  { %304 = vmatprep.subr.mxu0 %v1891_v9  ;;  %375 = vmatprep.subr.mxu1 %v1895_v10 }
  0x45   :  { %305 = vmatpush1.msra.mxu0 %v1897_v11  ;;  %376 = vmatpush1.msra.mxu1 %v1899_v12 }
  0x46   :  { %306 = vmatprep.subr.mxu0 %v1903_v13  ;;  %377 = vmatprep.subr.mxu1 %v1905_v14 }
  0x47   :  { %307 = vmatpush1.msra.mxu0 %v1909_v15  ;;  %378 = vmatpush1.msra.mxu1 %v1911_v16 }
  0x48   :  { %308 = vmatprep.subr.mxu0 %v1915_v17  ;;  %379 = vmatprep.subr.mxu1 %v1917_v18 }
  0x49   :  { %309 = vmatpush1.msra.mxu0 %v1921_v19  ;;  %380 = vmatpush1.msra.mxu1 %v1923_v20 }
  0x4a   :  { %310 = vmatprep.subr.mxu0 %v1927_v21  ;;  %381 = vmatprep.subr.mxu1 %v1929_v22 }
  0x4b   :  { %311 = vmatpush1.msra.mxu0 %v1933_v23  ;;  %382 = vmatpush1.msra.mxu1 %v1935_v24 }
  0x4c   :  { %312 = vmatprep.subr.mxu0 %v1939_v25  ;;  %383 = vmatprep.subr.mxu1 %v1941_v26 }
  0x4d   :  { %313 = vmatpush1.msra.mxu0 %v1945_v27  ;;  %384 = vmatpush1.msra.mxu1 %v1947_v28 }
  0x4e   :  { %314 = vmatprep.subr.mxu0 %v1951_v29  ;;  %385 = vmatprep.subr.mxu1 %v1953_v30 }
  0x4f   :  { %315 = vmatpush1.msra.mxu0 %v1957_v31  ;;  %386 = vmatpush1.msra.mxu1 %v1959_v32 }
  0x50   :  { %316 = vmatprep.subr.mxu0 %v1963_v33  ;;  %387 = vmatprep.subr.mxu1 %v1965_v34 }
  0x51   :  { %317 = vmatpush1.msra.mxu0 %v1969_v35  ;;  %388 = vmatpush1.msra.mxu1 %v1971_v36 }
  0x52   :  { %318 = vmatprep.subr.mxu0 %v1975_v37  ;;  %389 = vmatprep.subr.mxu1 %v1977_v38 }
  0x53   :  { %319 = vmatpush1.msra.mxu0 %v1981_v39  ;;  %390 = vmatpush1.msra.mxu1 %v1983_v40 }
  0x54   :  { %320 = vmatprep.subr.mxu0 %v1987_v41  ;;  %391 = vmatprep.subr.mxu1 %v1989_v42 }
  0x55   :  { %321 = vmatpush1.msra.mxu0 %v1993_v43  ;;  %392 = vmatpush1.msra.mxu1 %v1995_v44 }
  0x56   :  { %322 = vmatprep.subr.mxu0 %v1999_v45  ;;  %393 = vmatprep.subr.mxu1 %v2001_v46 }
  0x57   :  { %323 = vmatpush1.msra.mxu0 %v2005_v47  ;;  %394 = vmatpush1.msra.mxu1 %v2007_v48 }
  0x58   :  { %324 = vmatprep.subr.mxu0 %v2011_v49  ;;  %395 = vmatprep.subr.mxu1 %v2013_v50 }
  0x59   :  { %325 = vmatpush1.msra.mxu0 %v2017_v51  ;;  %396 = vmatpush1.msra.mxu1 %v2019_v52 }
  0x5a   :  { %326 = vmatprep.subr.mxu0 %v2023_v53  ;;  %397 = vmatprep.subr.mxu1 %v2790_v54  ;;  %v2791_v53 = vmov 0.0  }
  0x5b   :  { %327 = vmatpush1.msra.mxu0 %v2029_v55  ;;  %398 = vmatpush1.msra.mxu1 %v2031_v56 }
  0x5c   :  { %328 = vmatprep.subr.mxu0 %v2035_v57  ;;  %399 = vmatprep.subr.mxu1 %v2037_v58  ;;  %v1844_v58 = vmov 1983009808   ;;  %v264_v57 = vlaneseq }
  0x5d   :  { %329 = vmatpush1.msra.mxu0 %v2041_v59  ;;  %400 = vmatpush1.msra.mxu1 %v2043_v60  ;;  %v262_v59 = vunpack.c.l.s4 %v1844_v58 }
  0x5e   :  { %330 = vmatprep.subr.mxu0 %v2047_v61  ;;  %401 = vmatprep.subr.mxu1 %v2049_v62  ;;  %v265_v56 = vshrl.u32 %v264_v57, 7 }
  0x5f   :  { %331 = vmatpush1.msra.mxu0 %v2053_v63  ;;  %364 = vmatprep.mubr.f32.mxu0 %v2791_v53  ;;  %v263_v60 = vunpack.c.0.s8 %v262_v59 }
  0x60   :  { %402 = vmatpush1.msra.mxu1 %v2055_v0  ;;  %435 = vmatprep.mubr.f32.mxu1 %v2791_v53 }
  0x61   :  { %487 = vmatprep.subr.mxu0 %v1871_v1  ;;  %558 = vmatprep.subr.mxu1 %v1873_v2  ;;  %v2131_v62 = vsub.s32 %v263_v60, %v265_v56  ;;  %v112_v1 = vld [vmem:[#allocation4] sm:$0xff]  ;;  %v111_v60 = vld [vmem:[#allocation3] sm:$0x3] }
  0xff   :  { %v179_v61 = vpop.f32.mrf.mxu0  ;;  %v250_v55 = vpop.f32.mrf.mxu1 }
 0x101   :  { %v181_v63 = vpop.f32.mrf.mxu0  ;;  %v252_v54 = vpop.f32.mrf.mxu1 }
 0x102   :  { %v259_v52 = vcombine.low %v179_v61, %v181_v63  ;;  %v260_v51 = vcombine.low %v250_v55, %v252_v54  ;;  %v2799_v54 = vld [vmem:[#allocation23_spill] sm:$0xff] }
 0x104   :  { %v267_v0 = vrot.slane %v259_v52, %v2131_v62  ;;  %v274_v53 = vrot.slane %v260_v51, %v2131_v62  ;;  %v2797_v52 = vld [vmem:[#allocation21_spill] sm:$0xff] }
 0x106   :  { %v275_v50 = vcombine.low %v267_v0, %v274_v53  ;;  %v2798_v53 = vld [vmem:[#allocation22_spill] sm:$0xff] }
 0x108   :  { %v277_v2 = vadd.f32 %v275_v50, %v112_v1  ;;  %v2796_v50 = vld [vmem:[#allocation20_spill] sm:$0xff] }
 0x10a   :  { %v1626_v49 = vmul.f32 -1.442695, %v277_v2  ;;  %v285_v57 = vrot.slane %v277_v2, 4  ;;  %v2792_v2 = vld [vmem:[#allocation16_spill] sm:$0xff] }
 0x10c   :  { %1643 = vpow2.f32 %v1626_v49  ;;  %v2795_v49 = vld [vmem:[#allocation19_spill] sm:$0xff] }
 0x119   :  { %v1644_v58 = vpop.eup %1643 }
 0x11a   :  { %v281_v59 = vadd.f32 1.0, %v1644_v58  ;;  %v2800_v58 = vld [vmem:[#allocation24_spill] sm:$0xff] }
 0x11c   :  { %1645 = vrcp.f32 %v281_v59  ;;  %v2801_v59 = vld [vmem:[#allocation25_spill] sm:$0xff] }
 0x11d   :  { %1647 = vtanh.f32 %v285_v57  ;;  %v2802_v57 = vld [vmem:[#allocation26_spill] sm:$0xff] }
 0x129   :  { %v1646_v56 = vpop.eup %1645 }
 0x12a   :  { %v289_v48 = vrot.slane %v1646_v56, 2  ;;  %v1648_v47 = vpop.eup %1647  ;;  %v295_v51 = vrot.slane %v1646_v56, 6 }
 0x12b   :  { %v292_v61 = vmul.f32 %v1648_v47, %v1646_v56  ;;  %v2793_v47 = vld [vmem:[#allocation17_spill] sm:$0xff]  ;;  %v2803_v56 = vld [vmem:[#allocation27_spill] sm:$0xff] }
 0x12c   :  { %v291_v55 = vmul.f32 %v289_v48, %v111_v60  ;;  %v2794_v48 = vld [vmem:[#allocation18_spill] sm:$0xff]  ;;  %v2804_v60 = vld [vmem:[#allocation28_spill] sm:$0xff] }
 0x12e   :  { %v2135_v63 = vadd.f32 %v292_v61, %v291_v55  ;;  %v2805_v61 = vld [vmem:[#allocation29_spill] sm:$0xff]  ;;  %v2806_v55 = vld [vmem:[#allocation30_spill] sm:$0xff] }
 0x130   :  { %1649 = vtanh.f32 %v2135_v63 }
 0x13d   :  { %v1650_v0 = vpop.eup %1649 }
 0x13e   :  { %v297_v1 = vmul.f32 %v1650_v0, %v295_v51  ;;  %v2807_v51 = vld [vmem:[#allocation31_spill] sm:$0xff]  ;;  %v2808_v0 = vld [vmem:[#allocation32_spill] sm:$0xff] }
 0x140   :  { %365 = vmatmul.mubr.f32.vlgmr.msra.gmra.mxu0 %v297_v1  ;;  %436 = vmatmul.mubr.f32.vlgmr.msra.gmra.mxu1 %v297_v1  ;;  %v2809_v1 = vmov 0.0  }
 0x141   :  { %488 = vmatpush1.msra.mxu0 %v1875_v3  ;;  %559 = vmatpush1.msra.mxu1 %v1879_v4 }
 0x142   :  { %489 = vmatprep.subr.mxu0 %v1881_v5  ;;  %560 = vmatprep.subr.mxu1 %v1883_v6 }
 0x143   :  { %490 = vmatpush1.msra.mxu0 %v1887_v7  ;;  %561 = vmatpush1.msra.mxu1 %v1889_v8 }
 0x144   :  { %491 = vmatprep.subr.mxu0 %v1891_v9  ;;  %562 = vmatprep.subr.mxu1 %v1895_v10 }
 0x145   :  { %492 = vmatpush1.msra.mxu0 %v1897_v11  ;;  %563 = vmatpush1.msra.mxu1 %v1899_v12 }
 0x146   :  { %493 = vmatprep.subr.mxu0 %v1903_v13  ;;  %564 = vmatprep.subr.mxu1 %v1905_v14 }
 0x147   :  { %494 = vmatpush1.msra.mxu0 %v1909_v15  ;;  %565 = vmatpush1.msra.mxu1 %v1911_v16 }
 0x148   :  { %495 = vmatprep.subr.mxu0 %v1915_v17  ;;  %566 = vmatprep.subr.mxu1 %v1917_v18 }
 0x149   :  { %496 = vmatpush1.msra.mxu0 %v1921_v19  ;;  %567 = vmatpush1.msra.mxu1 %v1923_v20 }
 0x14a   :  { %497 = vmatprep.subr.mxu0 %v1927_v21  ;;  %568 = vmatprep.subr.mxu1 %v1929_v22 }
 0x14b   :  { %498 = vmatpush1.msra.mxu0 %v1933_v23  ;;  %569 = vmatpush1.msra.mxu1 %v1935_v24 }
 0x14c   :  { %499 = vmatprep.subr.mxu0 %v1939_v25  ;;  %570 = vmatprep.subr.mxu1 %v1941_v26 }
 0x14d   :  { %500 = vmatpush1.msra.mxu0 %v1945_v27  ;;  %571 = vmatpush1.msra.mxu1 %v1947_v28 }
 0x14e   :  { %501 = vmatprep.subr.mxu0 %v1951_v29  ;;  %572 = vmatprep.subr.mxu1 %v1953_v30 }
 0x14f   :  { %502 = vmatpush1.msra.mxu0 %v1957_v31  ;;  %573 = vmatpush1.msra.mxu1 %v1959_v32 }
 0x150   :  { %503 = vmatprep.subr.mxu0 %v1963_v33  ;;  %574 = vmatprep.subr.mxu1 %v1965_v34 }
 0x151   :  { %504 = vmatpush1.msra.mxu0 %v1969_v35  ;;  %575 = vmatpush1.msra.mxu1 %v1971_v36 }
 0x152   :  { %505 = vmatprep.subr.mxu0 %v1975_v37  ;;  %576 = vmatprep.subr.mxu1 %v1977_v38 }
 0x153   :  { %506 = vmatpush1.msra.mxu0 %v1981_v39  ;;  %577 = vmatpush1.msra.mxu1 %v1983_v40 }
 0x154   :  { %507 = vmatprep.subr.mxu0 %v1987_v41  ;;  %578 = vmatprep.subr.mxu1 %v1989_v42 }
 0x155   :  { %508 = vmatpush1.msra.mxu0 %v1993_v43  ;;  %579 = vmatpush1.msra.mxu1 %v1995_v44 }
 0x156   :  { %509 = vmatprep.subr.mxu0 %v1999_v45  ;;  %580 = vmatprep.subr.mxu1 %v2001_v46 }
 0x157   :  { %510 = vmatpush1.msra.mxu0 %v2792_v2  ;;  %581 = vmatpush1.msra.mxu1 %v2793_v47 }
 0x158   :  { %511 = vmatprep.subr.mxu0 %v2794_v48  ;;  %582 = vmatprep.subr.mxu1 %v2795_v49 }
 0x159   :  { %512 = vmatpush1.msra.mxu0 %v2796_v50  ;;  %583 = vmatpush1.msra.mxu1 %v2797_v52  ;;  %v299_v52 = vld [vmem:[#allocation4 + $0x8] sm:$0xff] }
 0x15a   :  { %513 = vmatprep.subr.mxu0 %v2798_v53  ;;  %584 = vmatprep.subr.mxu1 %v2799_v54  ;;  %v2810_v54 = vld [vmem:[#allocation33_spill] sm:$0xff] }
 0x15b   :  { %514 = vmatpush1.msra.mxu0 %v2800_v58  ;;  %585 = vmatpush1.msra.mxu1 %v2801_v59  ;;  %v2811_v59 = vld [vmem:[#allocation13_spill] sm:$0xff] }
 0x15c   :  { %515 = vmatprep.subr.mxu0 %v2802_v57  ;;  %586 = vmatprep.subr.mxu1 %v2803_v56  ;;  %v2812_v57 = vld [vmem:[#allocation14_spill] sm:$0xff] }
 0x15d   :  { %516 = vmatpush1.msra.mxu0 %v2804_v60  ;;  %587 = vmatpush1.msra.mxu1 %v2805_v61 }
 0x15e   :  { %517 = vmatprep.subr.mxu0 %v2806_v55  ;;  %588 = vmatprep.subr.mxu1 %v2807_v51 }
 0x15f   :  { %518 = vmatpush1.msra.mxu0 %v2808_v0  ;;  %551 = vmatprep.mubr.f32.mxu0 %v2809_v1 }
 0x160   :  { %589 = vmatpush1.msra.mxu1 %v2810_v54  ;;  %622 = vmatprep.mubr.f32.mxu1 %v2809_v1 }
 0x161   :  { %674 = vmatprep.subr.mxu0 %v2811_v59  ;;  %745 = vmatprep.subr.mxu1 %v2812_v57 }
 0x200   :  { %v366_v56 = vpop.f32.mrf.mxu0  ;;  %v437_v60 = vpop.f32.mrf.mxu1 }
 0x202   :  { %v368_v58 = vpop.f32.mrf.mxu0  ;;  %v439_v61 = vpop.f32.mrf.mxu1 }
 0x203   :  { %v446_v53 = vcombine.low %v366_v56, %v368_v58  ;;  %v447_v55 = vcombine.low %v437_v60, %v439_v61  ;;  %v2823_v61 = vld [vmem:[#allocation25_spill] sm:$0xff] }
 0x205   :  { %v454_v51 = vrot.slane %v446_v53, %v2131_v62  ;;  %v461_v0 = vrot.slane %v447_v55, %v2131_v62  ;;  %v2824_v55 = vld [vmem:[#allocation26_spill] sm:$0xff] }
 0x207   :  { %v462_v50 = vcombine.low %v454_v51, %v461_v0  ;;  %v2825_v51 = vld [vmem:[#allocation27_spill] sm:$0xff]  ;;  %v2826_v0 = vld [vmem:[#allocation28_spill] sm:$0xff] }
 0x209   :  { %v464_v49 = vadd.f32 %v462_v50, %v299_v52  ;;  %v2819_v52 = vld [vmem:[#allocation21_spill] sm:$0xff] }
 0x20b   :  { %v1627_v54 = vmul.f32 -1.442695, %v464_v49  ;;  %v472_v59 = vrot.slane %v464_v49, 4  ;;  %v2818_v49 = vld [vmem:[#allocation20_spill] sm:$0xff] }
 0x20d   :  { %1651 = vpow2.f32 %v1627_v54  ;;  %v2820_v54 = vld [vmem:[#allocation22_spill] sm:$0xff] }
 0x21a   :  { %v1652_v1 = vpop.eup %1651 }
 0x21b   :  { %v468_v48 = vadd.f32 1.0, %v1652_v1  ;;  %v2827_v1 = vld [vmem:[#allocation29_spill] sm:$0xff] }
 0x21d   :  { %1653 = vrcp.f32 %v468_v48  ;;  %v2817_v48 = vld [vmem:[#allocation19_spill] sm:$0xff] }
 0x21e   :  { %1655 = vtanh.f32 %v472_v59  ;;  %v2821_v59 = vld [vmem:[#allocation23_spill] sm:$0xff] }
 0x22a   :  { %v1654_v57 = vpop.eup %1653 }
 0x22b   :  { %v476_v47 = vrot.slane %v1654_v57, 2  ;;  %v1656_v2 = vpop.eup %1655  ;;  %v482_v53 = vrot.slane %v1654_v57, 6 }
 0x22c   :  { %v479_v46 = vmul.f32 %v1656_v2, %v1654_v57  ;;  %v2815_v2 = vld [vmem:[#allocation17_spill] sm:$0xff]  ;;  %v2822_v57 = vld [vmem:[#allocation24_spill] sm:$0xff] }
 0x22d   :  { %v478_v58 = vmul.f32 %v476_v47, %v2135_v63  ;;  %v2814_v63 = vld [vmem:[#allocation16_spill] sm:$0xff]  ;;  %v2816_v47 = vld [vmem:[#allocation18_spill] sm:$0xff] }
 0x22f   :  { %v2207_v56 = vadd.f32 %v479_v46, %v478_v58  ;;  %v2813_v46 = vld [vmem:[#allocation15_spill] sm:$0xff]  ;;  %v2828_v58 = vld [vmem:[#allocation30_spill] sm:$0xff] }
 0x231   :  { %1657 = vtanh.f32 %v2207_v56 }
 0x23e   :  { %v1658_v60 = vpop.eup %1657 }
 0x23f   :  { %v484_v50 = vmul.f32 %v1658_v60, %v482_v53  ;;  %v2829_v53 = vld [vmem:[#allocation31_spill] sm:$0xff]  ;;  %v2830_v60 = vld [vmem:[#allocation32_spill] sm:$0xff] }
 0x241   :  { %552 = vmatmul.mubr.f32.vlgmr.msra.gmra.mxu0 %v484_v50  ;;  %623 = vmatmul.mubr.f32.vlgmr.msra.gmra.mxu1 %v484_v50  ;;  %v2831_v50 = vmov 0.0  }
 0x242   :  { %675 = vmatpush1.msra.mxu0 %v1875_v3  ;;  %746 = vmatpush1.msra.mxu1 %v1879_v4 }
 0x243   :  { %676 = vmatprep.subr.mxu0 %v1881_v5  ;;  %747 = vmatprep.subr.mxu1 %v1883_v6 }
 0x244   :  { %677 = vmatpush1.msra.mxu0 %v1887_v7  ;;  %748 = vmatpush1.msra.mxu1 %v1889_v8 }
 0x245   :  { %678 = vmatprep.subr.mxu0 %v1891_v9  ;;  %749 = vmatprep.subr.mxu1 %v1895_v10 }
 0x246   :  { %679 = vmatpush1.msra.mxu0 %v1897_v11  ;;  %750 = vmatpush1.msra.mxu1 %v1899_v12 }
 0x247   :  { %680 = vmatprep.subr.mxu0 %v1903_v13  ;;  %751 = vmatprep.subr.mxu1 %v1905_v14 }
 0x248   :  { %681 = vmatpush1.msra.mxu0 %v1909_v15  ;;  %752 = vmatpush1.msra.mxu1 %v1911_v16 }
 0x249   :  { %682 = vmatprep.subr.mxu0 %v1915_v17  ;;  %753 = vmatprep.subr.mxu1 %v1917_v18 }
 0x24a   :  { %683 = vmatpush1.msra.mxu0 %v1921_v19  ;;  %754 = vmatpush1.msra.mxu1 %v1923_v20 }
 0x24b   :  { %684 = vmatprep.subr.mxu0 %v1927_v21  ;;  %755 = vmatprep.subr.mxu1 %v1929_v22 }
 0x24c   :  { %685 = vmatpush1.msra.mxu0 %v1933_v23  ;;  %756 = vmatpush1.msra.mxu1 %v1935_v24 }
 0x24d   :  { %686 = vmatprep.subr.mxu0 %v1939_v25  ;;  %757 = vmatprep.subr.mxu1 %v1941_v26 }
 0x24e   :  { %687 = vmatpush1.msra.mxu0 %v1945_v27  ;;  %758 = vmatpush1.msra.mxu1 %v1947_v28 }
 0x24f   :  { %688 = vmatprep.subr.mxu0 %v1951_v29  ;;  %759 = vmatprep.subr.mxu1 %v1953_v30 }
 0x250   :  { %689 = vmatpush1.msra.mxu0 %v1957_v31  ;;  %760 = vmatpush1.msra.mxu1 %v1959_v32 }
 0x251   :  { %690 = vmatprep.subr.mxu0 %v1963_v33  ;;  %761 = vmatprep.subr.mxu1 %v1965_v34 }
 0x252   :  { %691 = vmatpush1.msra.mxu0 %v1969_v35  ;;  %762 = vmatpush1.msra.mxu1 %v1971_v36 }
 0x253   :  { %692 = vmatprep.subr.mxu0 %v1975_v37  ;;  %763 = vmatprep.subr.mxu1 %v1977_v38 }
 0x254   :  { %693 = vmatpush1.msra.mxu0 %v1981_v39  ;;  %764 = vmatpush1.msra.mxu1 %v1983_v40 }
 0x255   :  { %694 = vmatprep.subr.mxu0 %v1987_v41  ;;  %765 = vmatprep.subr.mxu1 %v1989_v42 }
 0x256   :  { %695 = vmatpush1.msra.mxu0 %v1993_v43  ;;  %766 = vmatpush1.msra.mxu1 %v1995_v44 }
 0x257   :  { %696 = vmatprep.subr.mxu0 %v1999_v45  ;;  %767 = vmatprep.subr.mxu1 %v2813_v46 }
 0x258   :  { %697 = vmatpush1.msra.mxu0 %v2814_v63  ;;  %768 = vmatpush1.msra.mxu1 %v2815_v2 }
 0x259   :  { %698 = vmatprep.subr.mxu0 %v2816_v47  ;;  %769 = vmatprep.subr.mxu1 %v2817_v48 }
 0x25a   :  { %699 = vmatpush1.msra.mxu0 %v2818_v49  ;;  %770 = vmatpush1.msra.mxu1 %v2819_v52  ;;  %v486_v52 = vld [vmem:[#allocation4 + $0x10] sm:$0xff] }
 0x25b   :  { %700 = vmatprep.subr.mxu0 %v2820_v54  ;;  %771 = vmatprep.subr.mxu1 %v2821_v59  ;;  %v2832_v59 = vld [vmem:[#allocation33_spill] sm:$0xff] }
 0x25c   :  { %701 = vmatpush1.msra.mxu0 %v2822_v57  ;;  %772 = vmatpush1.msra.mxu1 %v2823_v61  ;;  %v2833_v61 = vld [vmem:[#allocation13_spill] sm:$0xff] }
 0x25d   :  { %702 = vmatprep.subr.mxu0 %v2824_v55  ;;  %773 = vmatprep.subr.mxu1 %v2825_v51  ;;  %v2834_v55 = vld [vmem:[#allocation14_spill] sm:$0xff] }
 0x25e   :  { %703 = vmatpush1.msra.mxu0 %v2826_v0  ;;  %774 = vmatpush1.msra.mxu1 %v2827_v1 }
 0x25f   :  { %704 = vmatprep.subr.mxu0 %v2828_v58  ;;  %775 = vmatprep.subr.mxu1 %v2829_v53 }
 0x260   :  { %705 = vmatpush1.msra.mxu0 %v2830_v60  ;;  %738 = vmatprep.mubr.f32.mxu0 %v2831_v50 }
 0x261   :  { %776 = vmatpush1.msra.mxu1 %v2832_v59  ;;  %809 = vmatprep.mubr.f32.mxu1 %v2831_v50 }
 0x262   :  { %861 = vmatprep.subr.mxu0 %v2833_v61  ;;  %932 = vmatprep.subr.mxu1 %v2834_v55 }
 0x301   :  { %v553_v51 = vpop.f32.mrf.mxu0  ;;  %v624_v0 = vpop.f32.mrf.mxu1 }
 0x303   :  { %v555_v57 = vpop.f32.mrf.mxu0  ;;  %v626_v1 = vpop.f32.mrf.mxu1 }
 0x304   :  { %v633_v54 = vcombine.low %v553_v51, %v555_v57  ;;  %v634_v58 = vcombine.low %v624_v0, %v626_v1 }
 0x306   :  { %v641_v53 = vrot.slane %v633_v54, %v2131_v62  ;;  %v648_v60 = vrot.slane %v634_v58, %v2131_v62 }
 0x308   :  { %v649_v49 = vcombine.low %v641_v53, %v648_v60 }
 0x30a   :  { %v651_v48 = vadd.f32 %v649_v49, %v486_v52  ;;  %v2855_v52 = vld [vmem:[#allocation13_spill] sm:$0xff] }
 0x30c   :  { %v1628_v59 = vmul.f32 -1.442695, %v651_v48  ;;  %v659_v61 = vrot.slane %v651_v48, 4  ;;  %v2854_v48 = vld [vmem:[#allocation33_spill] sm:$0xff] }
 0x30e   :  { %1659 = vpow2.f32 %v1628_v59  ;;  %v2856_v59 = vld [vmem:[#allocation14_spill] sm:$0xff] }
 0x31b   :  { %v1660_v50 = vpop.eup %1659 }
 0x31c   :  { %v655_v47 = vadd.f32 1.0, %v1660_v50 }
 0x31e   :  { %1661 = vrcp.f32 %v655_v47  ;;  %v2853_v47 = vmov 0.0  }
 0x31f   :  { %1663 = vtanh.f32 %v659_v61 }
 0x32b   :  { %v1662_v55 = vpop.eup %1661 }
 0x32c   :  { %v663_v2 = vrot.slane %v1662_v55, 2  ;;  %v1664_v63 = vpop.eup %1663  ;;  %v669_v54 = vrot.slane %v1662_v55, 6 }
 0x32d   :  { %v666_v46 = vmul.f32 %v1664_v63, %v1662_v55  ;;  %v2851_v63 = vld [vmem:[#allocation31_spill] sm:$0xff] }
 0x32e   :  { %v665_v57 = vmul.f32 %v663_v2, %v2207_v56  ;;  %v2849_v56 = vld [vmem:[#allocation29_spill] sm:$0xff]  ;;  %v2852_v2 = vld [vmem:[#allocation32_spill] sm:$0xff] }
 0x330   :  { %v2279_v51 = vadd.f32 %v666_v46, %v665_v57  ;;  %v2850_v46 = vld [vmem:[#allocation30_spill] sm:$0xff] }
 0x332   :  { %1665 = vtanh.f32 %v2279_v51 }
 0x33f   :  { %v1666_v0 = vpop.eup %1665 }
 0x340   :  { %v671_v49 = vmul.f32 %v1666_v0, %v669_v54  ;;  %v673_v54 = vld [vmem:[#allocation4 + $0x18] sm:$0xff] }
 0x342   :  { %739 = vmatmul.mubr.f32.vlgmr.msra.gmra.mxu0 %v671_v49  ;;  %810 = vmatmul.mubr.f32.vlgmr.msra.gmra.mxu1 %v671_v49 }
 0x343   :  { %862 = vmatpush1.msra.mxu0 %v1875_v3  ;;  %933 = vmatpush1.msra.mxu1 %v1879_v4  ;;  %v2835_v3 = vld [vmem:[#allocation15_spill] sm:$0xff]  ;;  %v2836_v4 = vld [vmem:[#allocation16_spill] sm:$0xff] }
 0x344   :  { %863 = vmatprep.subr.mxu0 %v1881_v5  ;;  %934 = vmatprep.subr.mxu1 %v1883_v6  ;;  %v2837_v5 = vld [vmem:[#allocation17_spill] sm:$0xff]  ;;  %v2838_v6 = vld [vmem:[#allocation18_spill] sm:$0xff] }
 0x345   :  { %864 = vmatpush1.msra.mxu0 %v1887_v7  ;;  %935 = vmatpush1.msra.mxu1 %v1889_v8  ;;  %v2839_v7 = vld [vmem:[#allocation19_spill] sm:$0xff]  ;;  %v2840_v8 = vld [vmem:[#allocation20_spill] sm:$0xff] }
 0x346   :  { %865 = vmatprep.subr.mxu0 %v1891_v9  ;;  %936 = vmatprep.subr.mxu1 %v1895_v10  ;;  %v2841_v9 = vld [vmem:[#allocation21_spill] sm:$0xff]  ;;  %v2842_v10 = vld [vmem:[#allocation22_spill] sm:$0xff] }
 0x347   :  { %866 = vmatpush1.msra.mxu0 %v1897_v11  ;;  %937 = vmatpush1.msra.mxu1 %v1899_v12  ;;  %v2843_v11 = vld [vmem:[#allocation23_spill] sm:$0xff]  ;;  %v2844_v12 = vld [vmem:[#allocation24_spill] sm:$0xff] }
 0x348   :  { %867 = vmatprep.subr.mxu0 %v1903_v13  ;;  %938 = vmatprep.subr.mxu1 %v1905_v14  ;;  %v2845_v13 = vld [vmem:[#allocation25_spill] sm:$0xff]  ;;  %v2846_v14 = vld [vmem:[#allocation26_spill] sm:$0xff] }
 0x349   :  { %868 = vmatpush1.msra.mxu0 %v1909_v15  ;;  %939 = vmatpush1.msra.mxu1 %v1911_v16  ;;  %v2847_v15 = vld [vmem:[#allocation27_spill] sm:$0xff]  ;;  %v2848_v16 = vld [vmem:[#allocation28_spill] sm:$0xff] }
 0x34a   :  { %869 = vmatprep.subr.mxu0 %v1915_v17  ;;  %940 = vmatprep.subr.mxu1 %v1917_v18 }
 0x34b   :  { %870 = vmatpush1.msra.mxu0 %v1921_v19  ;;  %941 = vmatpush1.msra.mxu1 %v1923_v20 }
 0x34c   :  { %871 = vmatprep.subr.mxu0 %v1927_v21  ;;  %942 = vmatprep.subr.mxu1 %v1929_v22 }
 0x34d   :  { %872 = vmatpush1.msra.mxu0 %v1933_v23  ;;  %943 = vmatpush1.msra.mxu1 %v1935_v24 }
 0x34e   :  { %873 = vmatprep.subr.mxu0 %v1939_v25  ;;  %944 = vmatprep.subr.mxu1 %v1941_v26 }
 0x34f   :  { %874 = vmatpush1.msra.mxu0 %v1945_v27  ;;  %945 = vmatpush1.msra.mxu1 %v1947_v28 }
 0x350   :  { %875 = vmatprep.subr.mxu0 %v1951_v29  ;;  %946 = vmatprep.subr.mxu1 %v1953_v30 }
 0x351   :  { %876 = vmatpush1.msra.mxu0 %v1957_v31  ;;  %947 = vmatpush1.msra.mxu1 %v1959_v32 }
 0x352   :  { %877 = vmatprep.subr.mxu0 %v1963_v33  ;;  %948 = vmatprep.subr.mxu1 %v1965_v34 }
 0x353   :  { %878 = vmatpush1.msra.mxu0 %v1969_v35  ;;  %949 = vmatpush1.msra.mxu1 %v1971_v36 }
 0x354   :  { %879 = vmatprep.subr.mxu0 %v1975_v37  ;;  %950 = vmatprep.subr.mxu1 %v1977_v38 }
 0x355   :  { %880 = vmatpush1.msra.mxu0 %v1981_v39  ;;  %951 = vmatpush1.msra.mxu1 %v1983_v40 }
 0x356   :  { %881 = vmatprep.subr.mxu0 %v1987_v41  ;;  %952 = vmatprep.subr.mxu1 %v1989_v42 }
 0x357   :  { %882 = vmatpush1.msra.mxu0 %v1993_v43  ;;  %953 = vmatpush1.msra.mxu1 %v1995_v44 }
 0x358   :  { %883 = vmatprep.subr.mxu0 %v1999_v45  ;;  %954 = vmatprep.subr.mxu1 %v2835_v3 }
 0x359   :  { %884 = vmatpush1.msra.mxu0 %v2836_v4  ;;  %955 = vmatpush1.msra.mxu1 %v2837_v5 }
 0x35a   :  { %885 = vmatprep.subr.mxu0 %v2838_v6  ;;  %956 = vmatprep.subr.mxu1 %v2839_v7 }
 0x35b   :  { %886 = vmatpush1.msra.mxu0 %v2840_v8  ;;  %957 = vmatpush1.msra.mxu1 %v2841_v9 }
 0x35c   :  { %887 = vmatprep.subr.mxu0 %v2842_v10  ;;  %958 = vmatprep.subr.mxu1 %v2843_v11 }
 0x35d   :  { %888 = vmatpush1.msra.mxu0 %v2844_v12  ;;  %959 = vmatpush1.msra.mxu1 %v2845_v13 }
 0x35e   :  { %889 = vmatprep.subr.mxu0 %v2846_v14  ;;  %960 = vmatprep.subr.mxu1 %v2847_v15 }
 0x35f   :  { %890 = vmatpush1.msra.mxu0 %v2848_v16  ;;  %961 = vmatpush1.msra.mxu1 %v2849_v56 }
 0x360   :  { %891 = vmatprep.subr.mxu0 %v2850_v46  ;;  %962 = vmatprep.subr.mxu1 %v2851_v63 }
 0x361   :  { %892 = vmatpush1.msra.mxu0 %v2852_v2  ;;  %925 = vmatprep.mubr.f32.mxu0 %v2853_v47 }
 0x362   :  { %963 = vmatpush1.msra.mxu1 %v2854_v48  ;;  %996 = vmatprep.mubr.f32.mxu1 %v2853_v47 }
 0x363   :  { %1048 = vmatprep.subr.mxu0 %v2855_v52  ;;  %1119 = vmatprep.subr.mxu1 %v2856_v59 }
 0x402   :  { %v740_v61 = vpop.f32.mrf.mxu0  ;;  %v811_v55 = vpop.f32.mrf.mxu1 }
 0x404   :  { %v742_v1 = vpop.f32.mrf.mxu0  ;;  %v813_v58 = vpop.f32.mrf.mxu1 }
 0x405   :  { %v820_v53 = vcombine.low %v740_v61, %v742_v1  ;;  %v821_v60 = vcombine.low %v811_v55, %v813_v58 }
 0x407   :  { %v828_v50 = vrot.slane %v820_v53, %v2131_v62  ;;  %v835_v57 = vrot.slane %v821_v60, %v2131_v62  ;;  %v2375_v60 = vld [vmem:[#allocation7 + $0x1b8] sm:$0xff] }
 0x409   :  { %v836_v0 = vcombine.low %v828_v50, %v835_v57  ;;  %v2378_v50 = vld [vmem:[#allocation7 + $0x1a0] sm:$0xff]  ;;  %v2381_v57 = vld [vmem:[#allocation7 + $0x1b0] sm:$0xff] }
 0x40b   :  { %v838_v49 = vadd.f32 %v836_v0, %v673_v54  ;;  %v2384_v54 = vld [vmem:[#allocation7 + $0x188] sm:$0xff]  ;;  %v2387_v0 = vld [vmem:[#allocation7 + $0x198] sm:$0xff] }
 0x40d   :  { %v1629_v48 = vmul.f32 -1.442695, %v838_v49  ;;  %v846_v52 = vrot.slane %v838_v49, 4  ;;  %v2390_v49 = vld [vmem:[#allocation7 + $0x180] sm:$0xff] }
 0x40f   :  { %1667 = vpow2.f32 %v1629_v48  ;;  %v2354_v48 = vld [vmem:[#allocation7 + $0x1e0] sm:$0xff] }
 0x41c   :  { %v1668_v47 = vpop.eup %1667 }
 0x41d   :  { %v842_v2 = vadd.f32 1.0, %v1668_v47  ;;  %v2372_v47 = vld [vmem:[#allocation7 + $0x1a8] sm:$0xff] }
 0x41f   :  { %1669 = vrcp.f32 %v842_v2  ;;  %v2357_v2 = vld [vmem:[#allocation7 + $0x1f0] sm:$0xff] }
 0x420   :  { %1671 = vtanh.f32 %v846_v52  ;;  %v2393_v52 = vld [vmem:[#allocation7 + $0x190] sm:$0xff] }
 0x42c   :  { %v1670_v59 = vpop.eup %1669 }
 0x42d   :  { %v850_v63 = vrot.slane %v1670_v59, 2  ;;  %v1672_v46 = vpop.eup %1671  ;;  %v856_v1 = vrot.slane %v1670_v59, 6 }
 0x42e   :  { %v853_v56 = vmul.f32 %v1672_v46, %v1670_v59  ;;  %v2360_v46 = vld [vmem:[#allocation7 + $0x1c8] sm:$0xff]  ;;  %v2505_v59 = vld [vmem:[#allocation7 + $0x130] sm:$0xff] }
 0x42f   :  { %v852_v61 = vmul.f32 %v850_v63, %v2279_v51  ;;  %v2363_v51 = vld [vmem:[#allocation7 + $0x1d8] sm:$0xff]  ;;  %v2369_v63 = vld [vmem:[#allocation7 + $0x1d0] sm:$0xff] }
 0x431   :  { %v2351_v55 = vadd.f32 %v853_v56, %v852_v61  ;;  %v2366_v56 = vld [vmem:[#allocation7 + $0x1c0] sm:$0xff]  ;;  %v2508_v61 = vld [vmem:[#allocation7 + $0x108] sm:$0xff] }
 0x433   :  { %1673 = vtanh.f32 %v2351_v55 }
 0x440   :  { %v1674_v58 = vpop.eup %1673 }
 0x441   :  { %v858_v53 = vmul.f32 %v1674_v58, %v856_v1  ;;  %v2514_v1 = vld [vmem:[#allocation7 + $0x100] sm:$0xff]  ;;  %v2517_v58 = vld [vmem:[#allocation7 + $0x110] sm:$0xff] }
 0x443   :  { %926 = vmatmul.mubr.f32.vlgmr.msra.gmra.mxu0 %v858_v53  ;;  %997 = vmatmul.mubr.f32.vlgmr.msra.gmra.mxu1 %v858_v53  ;;  %v2520_v53 = vld [vmem:[#allocation7 + $0xe8] sm:$0xff] }
 0x444   :  { %1049 = vmatpush1.msra.mxu0 %v2354_v48  ;;  %1120 = vmatpush1.msra.mxu1 %v2357_v2 }
 0x445   :  { %1050 = vmatprep.subr.mxu0 %v2360_v46  ;;  %1121 = vmatprep.subr.mxu1 %v2363_v51 }
 0x446   :  { %1051 = vmatpush1.msra.mxu0 %v2366_v56  ;;  %1122 = vmatpush1.msra.mxu1 %v2369_v63 }
 0x447   :  { %1052 = vmatprep.subr.mxu0 %v2372_v47  ;;  %1123 = vmatprep.subr.mxu1 %v2375_v60 }
 0x448   :  { %1053 = vmatpush1.msra.mxu0 %v2378_v50  ;;  %1124 = vmatpush1.msra.mxu1 %v2381_v57 }
 0x449   :  { %1054 = vmatprep.subr.mxu0 %v2384_v54  ;;  %1125 = vmatprep.subr.mxu1 %v2387_v0 }
 0x44a   :  { %1055 = vmatpush1.msra.mxu0 %v2390_v49  ;;  %1126 = vmatpush1.msra.mxu1 %v2393_v52 }
 0x44b   :  { %1056 = vmatprep.subr.mxu0 %v1915_v17  ;;  %1127 = vmatprep.subr.mxu1 %v1917_v18  ;;  %v2857_v17 = vld [vmem:[#allocation29_spill] sm:$0xff]  ;;  %v2858_v18 = vld [vmem:[#allocation30_spill] sm:$0xff] }
 0x44c   :  { %1057 = vmatpush1.msra.mxu0 %v1921_v19  ;;  %1128 = vmatpush1.msra.mxu1 %v1923_v20  ;;  %v2859_v19 = vld [vmem:[#allocation31_spill] sm:$0xff]  ;;  %v2860_v20 = vld [vmem:[#allocation32_spill] sm:$0xff] }
 0x44d   :  { %1058 = vmatprep.subr.mxu0 %v1927_v21  ;;  %1129 = vmatprep.subr.mxu1 %v1929_v22  ;;  %v2861_v21 = vmov 0.0   ;;  %v2862_v22 = vld [vmem:[#allocation33_spill] sm:$0xff] }
 0x44e   :  { %1059 = vmatpush1.msra.mxu0 %v1933_v23  ;;  %1130 = vmatpush1.msra.mxu1 %v1935_v24  ;;  %v2446_v23 = vld [vmem:[#allocation7 + $0x1e8] sm:$0xff]  ;;  %v2449_v24 = vld [vmem:[#allocation7 + $0x1f8] sm:$0xff] }
 0x44f   :  { %1060 = vmatprep.subr.mxu0 %v1939_v25  ;;  %1131 = vmatprep.subr.mxu1 %v1941_v26 }
 0x450   :  { %1061 = vmatpush1.msra.mxu0 %v1945_v27  ;;  %1132 = vmatpush1.msra.mxu1 %v1947_v28 }
 0x451   :  { %1062 = vmatprep.subr.mxu0 %v1951_v29  ;;  %1133 = vmatprep.subr.mxu1 %v1953_v30 }
 0x452   :  { %1063 = vmatpush1.msra.mxu0 %v1957_v31  ;;  %1134 = vmatpush1.msra.mxu1 %v1959_v32 }
 0x453   :  { %1064 = vmatprep.subr.mxu0 %v1963_v33  ;;  %1135 = vmatprep.subr.mxu1 %v1965_v34  ;;  %v860_v33 = vld [vmem:[#allocation4 + $0x20] sm:$0xff] }
 0x454   :  { %1065 = vmatpush1.msra.mxu0 %v1969_v35  ;;  %1136 = vmatpush1.msra.mxu1 %v1971_v36 }
 0x455   :  { %1066 = vmatprep.subr.mxu0 %v1975_v37  ;;  %1137 = vmatprep.subr.mxu1 %v1977_v38 }
 0x456   :  { %1067 = vmatpush1.msra.mxu0 %v1981_v39  ;;  %1138 = vmatpush1.msra.mxu1 %v1983_v40 }
 0x457   :  { %1068 = vmatprep.subr.mxu0 %v1987_v41  ;;  %1139 = vmatprep.subr.mxu1 %v1989_v42 }
 0x458   :  { %1069 = vmatpush1.msra.mxu0 %v1993_v43  ;;  %1140 = vmatpush1.msra.mxu1 %v1995_v44 }
 0x459   :  { %1070 = vmatprep.subr.mxu0 %v1999_v45  ;;  %1141 = vmatprep.subr.mxu1 %v2835_v3 }
 0x45a   :  { %1071 = vmatpush1.msra.mxu0 %v2836_v4  ;;  %1142 = vmatpush1.msra.mxu1 %v2837_v5 }
 0x45b   :  { %1072 = vmatprep.subr.mxu0 %v2838_v6  ;;  %1143 = vmatprep.subr.mxu1 %v2839_v7  ;;  %v2472_v6 = vld [vmem:[#allocation7 + $0x168] sm:$0xff]  ;;  %v2475_v7 = vld [vmem:[#allocation7 + $0x178] sm:$0xff] }
 0x45c   :  { %1073 = vmatpush1.msra.mxu0 %v2840_v8  ;;  %1144 = vmatpush1.msra.mxu1 %v2841_v9  ;;  %v2478_v8 = vld [vmem:[#allocation7 + $0x160] sm:$0xff]  ;;  %v2481_v9 = vld [vmem:[#allocation7 + $0x170] sm:$0xff] }
 0x45d   :  { %1074 = vmatprep.subr.mxu0 %v2842_v10  ;;  %1145 = vmatprep.subr.mxu1 %v2843_v11  ;;  %v2484_v10 = vld [vmem:[#allocation7 + $0x148] sm:$0xff]  ;;  %v2487_v11 = vld [vmem:[#allocation7 + $0x158] sm:$0xff] }
 0x45e   :  { %1075 = vmatpush1.msra.mxu0 %v2844_v12  ;;  %1146 = vmatpush1.msra.mxu1 %v2845_v13  ;;  %v2490_v12 = vld [vmem:[#allocation7 + $0x140] sm:$0xff]  ;;  %v2493_v13 = vld [vmem:[#allocation7 + $0x150] sm:$0xff] }
 0x45f   :  { %1076 = vmatprep.subr.mxu0 %v2846_v14  ;;  %1147 = vmatprep.subr.mxu1 %v2847_v15  ;;  %v2496_v14 = vld [vmem:[#allocation7 + $0x128] sm:$0xff]  ;;  %v2499_v15 = vld [vmem:[#allocation7 + $0x138] sm:$0xff] }
 0x460   :  { %1077 = vmatpush1.msra.mxu0 %v2848_v16  ;;  %1148 = vmatpush1.msra.mxu1 %v2857_v17  ;;  %v2502_v16 = vld [vmem:[#allocation7 + $0x120] sm:$0xff]  ;;  %v2523_v17 = vld [vmem:[#allocation7 + $0xf8] sm:$0xff] }
 0x461   :  { %1078 = vmatprep.subr.mxu0 %v2858_v18  ;;  %1149 = vmatprep.subr.mxu1 %v2859_v19  ;;  %v2526_v18 = vld [vmem:[#allocation7 + $0xe0] sm:$0xff]  ;;  %v2529_v19 = vld [vmem:[#allocation7 + $0xf0] sm:$0xff] }
 0x462   :  { %1079 = vmatpush1.msra.mxu0 %v2860_v20  ;;  %1112 = vmatprep.mubr.f32.mxu0 %v2861_v21  ;;  %v2532_v20 = vld [vmem:[#allocation7 + $0xc8] sm:$0xff] }
 0x463   :  { %1150 = vmatpush1.msra.mxu1 %v2862_v22  ;;  %1183 = vmatprep.mubr.f32.mxu1 %v2861_v21  ;;  %v2535_v22 = vld [vmem:[#allocation7 + $0xd8] sm:$0xff] }
 0x464   :  { %1235 = vmatprep.subr.mxu0 %v2446_v23  ;;  %1306 = vmatprep.subr.mxu1 %v2449_v24 }
 0x503   :  { %v927_v25 = vpop.f32.mrf.mxu0  ;;  %v998_v26 = vpop.f32.mrf.mxu1 }
 0x505   :  { %v929_v27 = vpop.f32.mrf.mxu0  ;;  %v1000_v28 = vpop.f32.mrf.mxu1 }
 0x506   :  { %v1007_v29 = vcombine.low %v927_v25, %v929_v27  ;;  %v1008_v30 = vcombine.low %v998_v26, %v1000_v28  ;;  %v2538_v25 = vld [vmem:[#allocation7 + $0xc0] sm:$0xff]  ;;  %v2541_v26 = vld [vmem:[#allocation7 + $0xd0] sm:$0xff]  ;;  %v2544_v27 = vld [vmem:[#allocation7 + $0xa8] sm:$0xff] }
 0x507   :  { %v2547_v28 = vld [vmem:[#allocation7 + $0xb8] sm:$0xff] }
 0x508   :  { %v1015_v31 = vrot.slane %v1007_v29, %v2131_v62  ;;  %v1022_v32 = vrot.slane %v1008_v30, %v2131_v62  ;;  %v2550_v29 = vld [vmem:[#allocation7 + $0xa0] sm:$0xff]  ;;  %v2553_v30 = vld [vmem:[#allocation7 + $0xb0] sm:$0xff] }
 0x50a   :  { %v1023_v34 = vcombine.low %v1015_v31, %v1022_v32  ;;  %v2556_v31 = vld [vmem:[#allocation7 + $0x88] sm:$0xff]  ;;  %v2559_v32 = vld [vmem:[#allocation7 + $0x98] sm:$0xff] }
 0x50b   :  { %2863 = vst [vmem:[#allocation15_spill] sm:$0xff] %v2559_v32 }
 0x50c   :  { %v1025_v35 = vadd.f32 %v1023_v34, %v860_v33  ;;  %v2562_v33 = vld [vmem:[#allocation7 + $0x80] sm:$0xff]  ;;  %v2565_v34 = vld [vmem:[#allocation7 + $0x90] sm:$0xff] }
 0x50d   :  { %2864 = vst [vmem:[#allocation16_spill] sm:$0xff] %v2562_v33  ;;  %2865 = vst [vmem:[#allocation17_spill] sm:$0xff] %v2565_v34 }
 0x50e   :  { %v1630_v36 = vmul.f32 -1.442695, %v1025_v35  ;;  %v1033_v39 = vrot.slane %v1025_v35, 4  ;;  %v2568_v35 = vld [vmem:[#allocation7 + $0x68] sm:$0xff] }
 0x50f   :  { %2866 = vst [vmem:[#allocation18_spill] sm:$0xff] %v2568_v35 }
 0x510   :  { %1675 = vpow2.f32 %v1630_v36  ;;  %v2571_v36 = vld [vmem:[#allocation7 + $0x78] sm:$0xff] }
 0x511   :  { %2867 = vst [vmem:[#allocation19_spill] sm:$0xff] %v2571_v36 }
 0x51d   :  { %v1676_v37 = vpop.eup %1675 }
 0x51e   :  { %v1029_v38 = vadd.f32 1.0, %v1676_v37  ;;  %v2574_v37 = vld [vmem:[#allocation7 + $0x60] sm:$0xff] }
 0x51f   :  { %2868 = vst [vmem:[#allocation20_spill] sm:$0xff] %v2574_v37 }
 0x520   :  { %1677 = vrcp.f32 %v1029_v38  ;;  %v2577_v38 = vld [vmem:[#allocation7 + $0x70] sm:$0xff] }
 0x521   :  { %1679 = vtanh.f32 %v1033_v39  ;;  %2869 = vst [vmem:[#allocation21_spill] sm:$0xff] %v2577_v38  ;;  %v2580_v39 = vld [vmem:[#allocation7 + $0x48] sm:$0xff] }
 0x522   :  { %2870 = vst [vmem:[#allocation22_spill] sm:$0xff] %v2580_v39 }
 0x52d   :  { %v1678_v40 = vpop.eup %1677 }
 0x52e   :  { %v1037_v41 = vrot.slane %v1678_v40, 2  ;;  %v1680_v42 = vpop.eup %1679  ;;  %v1043_v3 = vrot.slane %v1678_v40, 6 }
 0x52f   :  { %v1040_v43 = vmul.f32 %v1680_v42, %v1678_v40  ;;  %v2583_v40 = vld [vmem:[#allocation7 + $0x58] sm:$0xff]  ;;  %v2589_v42 = vld [vmem:[#allocation7 + $0x50] sm:$0xff] }
 0x530   :  { %v1039_v44 = vmul.f32 %v1037_v41, %v2351_v55  ;;  %v2511_v55 = vld [vmem:[#allocation7 + $0x118] sm:$0xff]  ;;  %2871 = vst [vmem:[#allocation23_spill] sm:$0xff] %v2583_v40  ;;  %v2586_v41 = vld [vmem:[#allocation7 + $0x40] sm:$0xff]  ;;  %2873 = vst [vmem:[#allocation25_spill] sm:$0xff] %v2589_v42 }
 0x531   :  { %2872 = vst [vmem:[#allocation24_spill] sm:$0xff] %v2586_v41 }
 0x532   :  { %v2455_v45 = vadd.f32 %v1040_v43, %v1039_v44  ;;  %v2592_v43 = vld [vmem:[#allocation7 + $0x28] sm:$0xff]  ;;  %v2595_v44 = vld [vmem:[#allocation7 + $0x38] sm:$0xff] }
 0x533   :  { %2874 = vst [vmem:[#allocation26_spill] sm:$0xff] %v2592_v43  ;;  %2875 = vst [vmem:[#allocation27_spill] sm:$0xff] %v2595_v44 }
 0x534   :  { %1681 = vtanh.f32 %v2455_v45 }
 0x541   :  { %v1682_v4 = vpop.eup %1681 }
 0x542   :  { %v1045_v5 = vmul.f32 %v1682_v4, %v1043_v3  ;;  %v2598_v3 = vld [vmem:[#allocation7 + $0x20] sm:$0xff]  ;;  %v2601_v4 = vld [vmem:[#allocation7 + $0x30] sm:$0xff] }
 0x543   :  { %2876 = vst [vmem:[#allocation28_spill] sm:$0xff] %v2598_v3  ;;  %2877 = vst [vmem:[#allocation13_spill] sm:$0xff] %v2601_v4 }
 0x544   :  { %1113 = vmatmul.mubr.f32.vlgmr.msra.gmra.mxu0 %v1045_v5  ;;  %1184 = vmatmul.mubr.f32.vlgmr.msra.gmra.mxu1 %v1045_v5  ;;  %v2604_v5 = vld [vmem:[#allocation7 + $0x8] sm:$0xff] }
 0x545   :  { %1236 = vmatpush1.msra.mxu0 %v2354_v48  ;;  %1307 = vmatpush1.msra.mxu1 %v2357_v2  ;;  %2878 = vst [vmem:[#allocation14_spill] sm:$0xff] %v2604_v5 }
 0x546   :  { %1237 = vmatprep.subr.mxu0 %v2360_v46  ;;  %1308 = vmatprep.subr.mxu1 %v2363_v51 }
 0x547   :  { %1238 = vmatpush1.msra.mxu0 %v2366_v56  ;;  %1309 = vmatpush1.msra.mxu1 %v2369_v63 }
 0x548   :  { %1239 = vmatprep.subr.mxu0 %v2372_v47  ;;  %1310 = vmatprep.subr.mxu1 %v2375_v60 }
 0x549   :  { %1240 = vmatpush1.msra.mxu0 %v2378_v50  ;;  %1311 = vmatpush1.msra.mxu1 %v2381_v57 }
 0x54a   :  { %1241 = vmatprep.subr.mxu0 %v2384_v54  ;;  %1312 = vmatprep.subr.mxu1 %v2387_v0 }
 0x54b   :  { %1242 = vmatpush1.msra.mxu0 %v2390_v49  ;;  %1313 = vmatpush1.msra.mxu1 %v2393_v52 }
 0x54c   :  { %1243 = vmatprep.subr.mxu0 %v2472_v6  ;;  %1314 = vmatprep.subr.mxu1 %v2475_v7 }
 0x54d   :  { %1244 = vmatpush1.msra.mxu0 %v2478_v8  ;;  %1315 = vmatpush1.msra.mxu1 %v2481_v9 }
 0x54e   :  { %1245 = vmatprep.subr.mxu0 %v2484_v10  ;;  %1316 = vmatprep.subr.mxu1 %v2487_v11 }
 0x54f   :  { %1246 = vmatpush1.msra.mxu0 %v2490_v12  ;;  %1317 = vmatpush1.msra.mxu1 %v2493_v13 }
 0x550   :  { %1247 = vmatprep.subr.mxu0 %v2496_v14  ;;  %1318 = vmatprep.subr.mxu1 %v2499_v15 }
 0x551   :  { %1248 = vmatpush1.msra.mxu0 %v2502_v16  ;;  %1319 = vmatpush1.msra.mxu1 %v2505_v59 }
 0x552   :  { %1249 = vmatprep.subr.mxu0 %v2508_v61  ;;  %1320 = vmatprep.subr.mxu1 %v2511_v55 }
 0x553   :  { %1250 = vmatpush1.msra.mxu0 %v2514_v1  ;;  %1321 = vmatpush1.msra.mxu1 %v2517_v58 }
 0x554   :  { %1251 = vmatprep.subr.mxu0 %v2520_v53  ;;  %1322 = vmatprep.subr.mxu1 %v2523_v17 }
 0x555   :  { %1252 = vmatpush1.msra.mxu0 %v2526_v18  ;;  %1323 = vmatpush1.msra.mxu1 %v2529_v19 }
 0x556   :  { %1253 = vmatprep.subr.mxu0 %v2532_v20  ;;  %1324 = vmatprep.subr.mxu1 %v2535_v22 }
 0x557   :  { %1254 = vmatpush1.msra.mxu0 %v2538_v25  ;;  %1325 = vmatpush1.msra.mxu1 %v2541_v26 }
 0x558   :  { %1255 = vmatprep.subr.mxu0 %v2544_v27  ;;  %1326 = vmatprep.subr.mxu1 %v2547_v28 }
 0x559   :  { %1256 = vmatpush1.msra.mxu0 %v2550_v29  ;;  %1327 = vmatpush1.msra.mxu1 %v2553_v30 }
 0x55a   :  { %1257 = vmatprep.subr.mxu0 %v2556_v31  ;;  %1328 = vmatprep.subr.mxu1 %v2559_v32 }
 0x55b   :  { %1258 = vmatpush1.msra.mxu0 %v2562_v33  ;;  %1329 = vmatpush1.msra.mxu1 %v2565_v34 }
 0x55c   :  { %1259 = vmatprep.subr.mxu0 %v2568_v35  ;;  %1330 = vmatprep.subr.mxu1 %v2571_v36 }
 0x55d   :  { %1260 = vmatpush1.msra.mxu0 %v2574_v37  ;;  %1331 = vmatpush1.msra.mxu1 %v2577_v38  ;;  %v1047_v38 = vld [vmem:[#allocation4 + $0x28] sm:$0xff] }
 0x55e   :  { %1261 = vmatprep.subr.mxu0 %v2580_v39  ;;  %1332 = vmatprep.subr.mxu1 %v2583_v40 }
 0x55f   :  { %1262 = vmatpush1.msra.mxu0 %v2586_v41  ;;  %1333 = vmatpush1.msra.mxu1 %v2589_v42  ;;  %v2607_v42 = vld [vmem:[#allocation7 + $0x18] sm:$0xff] }
 0x560   :  { %1263 = vmatprep.subr.mxu0 %v2592_v43  ;;  %1334 = vmatprep.subr.mxu1 %v2595_v44  ;;  %2879 = vst [vmem:[#allocation29_spill] sm:$0xff] %v2607_v42  ;;  %v2610_v43 = vld [vmem:[#allocation7] sm:$0xff]  ;;  %v2614_v44 = vld [vmem:[#allocation7 + $0x10] sm:$0xff] }
 0x561   :  { %1264 = vmatpush1.msra.mxu0 %v2598_v3  ;;  %1335 = vmatpush1.msra.mxu1 %v2601_v4  ;;  %2880 = vst [vmem:[#allocation30_spill] sm:$0xff] %v2610_v43  ;;  %2881 = vst [vmem:[#allocation31_spill] sm:$0xff] %v2614_v44 }
 0x562   :  { %1265 = vmatprep.subr.mxu0 %v2604_v5  ;;  %1336 = vmatprep.subr.mxu1 %v2607_v42 }
 0x563   :  { %1266 = vmatpush1.msra.mxu0 %v2610_v43  ;;  %1299 = vmatprep.mubr.f32.mxu0 %v2861_v21 }
 0x564   :  { %1337 = vmatpush1.msra.mxu1 %v2614_v44  ;;  %1370 = vmatprep.mubr.f32.mxu1 %v2861_v21 }
 0x565   :  { %1422 = vmatprep.subr.mxu0 %v2446_v23  ;;  %1493 = vmatprep.subr.mxu1 %v2449_v24 }
 0x604   :  { %v1114_v5 = vpop.f32.mrf.mxu0  ;;  %v1185_v4 = vpop.f32.mrf.mxu1 }
 0x606   :  { %v1116_v3 = vpop.f32.mrf.mxu0  ;;  %v1187_v42 = vpop.f32.mrf.mxu1 }
 0x607   :  { %v1194_v41 = vcombine.low %v1114_v5, %v1116_v3  ;;  %v1195_v40 = vcombine.low %v1185_v4, %v1187_v42 }
 0x609   :  { %v1202_v43 = vrot.slane %v1194_v41, %v2131_v62  ;;  %v1209_v39 = vrot.slane %v1195_v40, %v2131_v62 }
 0x60b   :  { %v1210_v37 = vcombine.low %v1202_v43, %v1209_v39  ;;  %v1421_v43 = vld [vmem:[#allocation4 + $0x38] sm:$0xff] }
 0x60d   :  { %v1212_v36 = vadd.f32 %v1210_v37, %v1047_v38 }
 0x60f   :  { %v1631_v44 = vmul.f32 -1.442695, %v1212_v36  ;;  %v1220_v23 = vrot.slane %v1212_v36, 4 }
 0x611   :  { %1683 = vpow2.f32 %v1631_v44 }
 0x61e   :  { %v1684_v21 = vpop.eup %1683 }
 0x61f   :  { %v1216_v35 = vadd.f32 1.0, %v1684_v21  ;;  %v2896_v21 = vld [vmem:[#allocation13_spill] sm:$0xff] }
 0x621   :  { %1685 = vrcp.f32 %v1216_v35 }
 0x622   :  { %1687 = vtanh.f32 %v1220_v23 }
 0x62e   :  { %v1686_v24 = vpop.eup %1685 }
 0x62f   :  { %v1224_v34 = vrot.slane %v1686_v24, 2  ;;  %v1688_v33 = vpop.eup %1687  ;;  %v1230_v40 = vrot.slane %v1686_v24, 6 }
 0x630   :  { %v1227_v32 = vmul.f32 %v1688_v33, %v1686_v24 }
 0x631   :  { %v1226_v42 = vmul.f32 %v1224_v34, %v2455_v45  ;;  %v2897_v45 = vld [vmem:[#allocation14_spill] sm:$0xff] }
 0x633   :  { %v2623_v3 = vadd.f32 %v1227_v32, %v1226_v42 }
 0x635   :  { %1689 = vtanh.f32 %v2623_v3 }
 0x642   :  { %v1690_v39 = vpop.eup %1689 }
 0x643   :  { %v1232_v37 = vmul.f32 %v1690_v39, %v1230_v40 }
 0x645   :  { %1300 = vmatmul.mubr.f32.vlgmr.msra.gmra.mxu0 %v1232_v37  ;;  %1371 = vmatmul.mubr.f32.vlgmr.msra.gmra.mxu1 %v1232_v37 }
 0x646   :  { %1423 = vmatpush1.msra.mxu0 %v2354_v48  ;;  %1494 = vmatpush1.msra.mxu1 %v2357_v2  ;;  %v2882_v48 = vld [vmem:[#allocation15_spill] sm:$0xff]  ;;  %v2883_v2 = vld [vmem:[#allocation16_spill] sm:$0xff] }
 0x647   :  { %1424 = vmatprep.subr.mxu0 %v2360_v46  ;;  %1495 = vmatprep.subr.mxu1 %v2363_v51  ;;  %v2884_v46 = vld [vmem:[#allocation17_spill] sm:$0xff]  ;;  %v2885_v51 = vld [vmem:[#allocation18_spill] sm:$0xff] }
 0x648   :  { %1425 = vmatpush1.msra.mxu0 %v2366_v56  ;;  %1496 = vmatpush1.msra.mxu1 %v2369_v63  ;;  %v2886_v56 = vld [vmem:[#allocation19_spill] sm:$0xff]  ;;  %v2887_v63 = vld [vmem:[#allocation20_spill] sm:$0xff] }
 0x649   :  { %1426 = vmatprep.subr.mxu0 %v2372_v47  ;;  %1497 = vmatprep.subr.mxu1 %v2375_v60  ;;  %v2888_v47 = vld [vmem:[#allocation21_spill] sm:$0xff]  ;;  %v2889_v60 = vld [vmem:[#allocation22_spill] sm:$0xff] }
 0x64a   :  { %1427 = vmatpush1.msra.mxu0 %v2378_v50  ;;  %1498 = vmatpush1.msra.mxu1 %v2381_v57  ;;  %v2890_v50 = vld [vmem:[#allocation23_spill] sm:$0xff]  ;;  %v2891_v57 = vld [vmem:[#allocation24_spill] sm:$0xff] }
 0x64b   :  { %1428 = vmatprep.subr.mxu0 %v2384_v54  ;;  %1499 = vmatprep.subr.mxu1 %v2387_v0  ;;  %v2892_v54 = vld [vmem:[#allocation25_spill] sm:$0xff]  ;;  %v2893_v0 = vld [vmem:[#allocation26_spill] sm:$0xff] }
 0x64c   :  { %1429 = vmatpush1.msra.mxu0 %v2390_v49  ;;  %1500 = vmatpush1.msra.mxu1 %v2393_v52  ;;  %v2894_v49 = vld [vmem:[#allocation27_spill] sm:$0xff]  ;;  %v2895_v52 = vld [vmem:[#allocation28_spill] sm:$0xff] }
 0x64d   :  { %1430 = vmatprep.subr.mxu0 %v2472_v6  ;;  %1501 = vmatprep.subr.mxu1 %v2475_v7  ;;  %v2898_v6 = vld [vmem:[#allocation29_spill] sm:$0xff]  ;;  %v2899_v7 = vld [vmem:[#allocation30_spill] sm:$0xff] }
 0x64e   :  { %1431 = vmatpush1.msra.mxu0 %v2478_v8  ;;  %1502 = vmatpush1.msra.mxu1 %v2481_v9  ;;  %v2900_v8 = vmov 0.0   ;;  %v2901_v9 = vld [vmem:[#allocation31_spill] sm:$0xff] }
 0x64f   :  { %1432 = vmatprep.subr.mxu0 %v2484_v10  ;;  %1503 = vmatprep.subr.mxu1 %v2487_v11 }
 0x650   :  { %1433 = vmatpush1.msra.mxu0 %v2490_v12  ;;  %1504 = vmatpush1.msra.mxu1 %v2493_v13 }
 0x651   :  { %1434 = vmatprep.subr.mxu0 %v2496_v14  ;;  %1505 = vmatprep.subr.mxu1 %v2499_v15 }
 0x652   :  { %1435 = vmatpush1.msra.mxu0 %v2502_v16  ;;  %1506 = vmatpush1.msra.mxu1 %v2505_v59 }
 0x653   :  { %1436 = vmatprep.subr.mxu0 %v2508_v61  ;;  %1507 = vmatprep.subr.mxu1 %v2511_v55  ;;  %v1234_v61 = vld [vmem:[#allocation4 + $0x30] sm:$0xff] }
 0x654   :  { %1437 = vmatpush1.msra.mxu0 %v2514_v1  ;;  %1508 = vmatpush1.msra.mxu1 %v2517_v58 }
 0x655   :  { %1438 = vmatprep.subr.mxu0 %v2520_v53  ;;  %1509 = vmatprep.subr.mxu1 %v2523_v17 }
 0x656   :  { %1439 = vmatpush1.msra.mxu0 %v2526_v18  ;;  %1510 = vmatpush1.msra.mxu1 %v2529_v19 }
 0x657   :  { %1440 = vmatprep.subr.mxu0 %v2532_v20  ;;  %1511 = vmatprep.subr.mxu1 %v2535_v22 }
 0x658   :  { %1441 = vmatpush1.msra.mxu0 %v2538_v25  ;;  %1512 = vmatpush1.msra.mxu1 %v2541_v26 }
 0x659   :  { %1442 = vmatprep.subr.mxu0 %v2544_v27  ;;  %1513 = vmatprep.subr.mxu1 %v2547_v28 }
 0x65a   :  { %1443 = vmatpush1.msra.mxu0 %v2550_v29  ;;  %1514 = vmatpush1.msra.mxu1 %v2553_v30 }
 0x65b   :  { %1444 = vmatprep.subr.mxu0 %v2556_v31  ;;  %1515 = vmatprep.subr.mxu1 %v2882_v48 }
 0x65c   :  { %1445 = vmatpush1.msra.mxu0 %v2883_v2  ;;  %1516 = vmatpush1.msra.mxu1 %v2884_v46 }
 0x65d   :  { %1446 = vmatprep.subr.mxu0 %v2885_v51  ;;  %1517 = vmatprep.subr.mxu1 %v2886_v56 }
 0x65e   :  { %1447 = vmatpush1.msra.mxu0 %v2887_v63  ;;  %1518 = vmatpush1.msra.mxu1 %v2888_v47 }
 0x65f   :  { %1448 = vmatprep.subr.mxu0 %v2889_v60  ;;  %1519 = vmatprep.subr.mxu1 %v2890_v50 }
 0x660   :  { %1449 = vmatpush1.msra.mxu0 %v2891_v57  ;;  %1520 = vmatpush1.msra.mxu1 %v2892_v54 }
 0x661   :  { %1450 = vmatprep.subr.mxu0 %v2893_v0  ;;  %1521 = vmatprep.subr.mxu1 %v2894_v49 }
 0x662   :  { %1451 = vmatpush1.msra.mxu0 %v2895_v52  ;;  %1522 = vmatpush1.msra.mxu1 %v2896_v21 }
 0x663   :  { %1452 = vmatprep.subr.mxu0 %v2897_v45  ;;  %1523 = vmatprep.subr.mxu1 %v2898_v6 }
 0x664   :  { %1453 = vmatpush1.msra.mxu0 %v2899_v7  ;;  %1486 = vmatprep.mubr.f32.mxu0 %v2900_v8 }
 0x665   :  { %1524 = vmatpush1.msra.mxu1 %v2901_v9  ;;  %1557 = vmatprep.mubr.f32.mxu1 %v2900_v8 }
 0x705   :  { %v1301_v10 = vpop.f32.mrf.mxu0  ;;  %v1372_v11 = vpop.f32.mrf.mxu1 }
 0x707   :  { %v1303_v12 = vpop.f32.mrf.mxu0  ;;  %v1374_v13 = vpop.f32.mrf.mxu1 }
 0x708   :  { %v1381_v14 = vcombine.low %v1301_v10, %v1303_v12  ;;  %v1382_v15 = vcombine.low %v1372_v11, %v1374_v13 }
 0x70a   :  { %v1389_v16 = vrot.slane %v1381_v14, %v2131_v62  ;;  %v1396_v59 = vrot.slane %v1382_v15, %v2131_v62 }
 0x70c   :  { %v1397_v55 = vcombine.low %v1389_v16, %v1396_v59 }
 0x70e   :  { %v1399_v1 = vadd.f32 %v1397_v55, %v1234_v61 }
 0x710   :  { %v1632_v58 = vmul.f32 -1.442695, %v1399_v1  ;;  %v1407_v18 = vrot.slane %v1399_v1, 4 }
 0x712   :  { %1691 = vpow2.f32 %v1632_v58 }
 0x71f   :  { %v1692_v53 = vpop.eup %1691 }
 0x720   :  { %v1403_v17 = vadd.f32 1.0, %v1692_v53 }
 0x722   :  { %1693 = vrcp.f32 %v1403_v17 }
 0x723   :  { %1695 = vtanh.f32 %v1407_v18 }
 0x72f   :  { %v1694_v19 = vpop.eup %1693 }
 0x730   :  { %v1411_v20 = vrot.slane %v1694_v19, 2  ;;  %v1696_v22 = vpop.eup %1695  ;;  %v1417_v28 = vrot.slane %v1694_v19, 6 }
 0x731   :  { %v1414_v25 = vmul.f32 %v1696_v22, %v1694_v19 }
 0x732   :  { %v1413_v26 = vmul.f32 %v1411_v20, %v2623_v3 }
 0x734   :  { %v1415_v27 = vadd.f32 %v1414_v25, %v1413_v26 }
 0x736   :  { %1697 = vtanh.f32 %v1415_v27 }
 0x743   :  { %v1698_v29 = vpop.eup %1697 }
 0x744   :  { %v1419_v30 = vmul.f32 %v1698_v29, %v1417_v28 }
 0x746   :  { %1487 = vmatmul.mubr.f32.vlgmr.msra.gmra.mxu0 %v1419_v30  ;;  %1558 = vmatmul.mubr.f32.vlgmr.msra.gmra.mxu1 %v1419_v30 }
 0x806   :  { %v1488_v31 = vpop.f32.mrf.mxu0  ;;  %v1559_v32 = vpop.f32.mrf.mxu1 }
 0x808   :  { %v1490_v33 = vpop.f32.mrf.mxu0  ;;  %v1561_v34 = vpop.f32.mrf.mxu1 }
 0x809   :  { %v1568_v35 = vcombine.low %v1488_v31, %v1490_v33  ;;  %v1569_v36 = vcombine.low %v1559_v32, %v1561_v34 }
 0x80b   :  { %v1576_v38 = vrot.slane %v1568_v35, %v2131_v62  ;;  %v1583_v41 = vrot.slane %v1569_v36, %v2131_v62 }
 0x80d   :  { %v1584_v44 = vcombine.low %v1576_v38, %v1583_v41 }
 0x80f   :  { %v1586_v4 = vadd.f32 %v1584_v44, %v1421_v43 }
 0x811   :  { %v1633_v5 = vmul.f32 -1.442695, %v1586_v4  ;;  %v1594_v42 = vrot.slane %v1586_v4, 4 }
 0x813   :  { %1699 = vpow2.f32 %v1633_v5 }
 0x820   :  { %v1700_v23 = vpop.eup %1699 }
 0x821   :  { %v1590_v24 = vadd.f32 1.0, %v1700_v23 }
 0x823   :  { %1701 = vrcp.f32 %v1590_v24 }
 0x824   :  { %1703 = vtanh.f32 %v1594_v42 }
 0x830   :  { %v1702_v3 = vpop.eup %1701 }
 0x831   :  { %v1598_v40 = vrot.slane %v1702_v3, 2  ;;  %v1704_v39 = vpop.eup %1703  ;;  %v1604_v62 = vrot.slane %v1702_v3, 6 }
 0x832   :  { %v1601_v48 = vmul.f32 %v1704_v39, %v1702_v3 }
 0x833   :  { %v1600_v37 = vmul.f32 %v1598_v40, %v1415_v27 }
 0x835   :  { %v1602_v2 = vadd.f32 %v1601_v48, %v1600_v37 }
 0x837   :  { %1705 = vtanh.f32 %v1602_v2  ;;  %1608 = vst [vmem:[#allocation3] sm:$0x3] %v1602_v2 }
 0x844   :  { %v1706_v46 = vpop.eup %1705 }
 0x845   :  { %v1606_v51 = vmul.f32 %v1706_v46, %v1604_v62 }
 0x847   :  { %1607 = vst [vmem:[#allocation2] sm:$0x3] %v1606_v51  ;;  %1609 = vst [vmem:[#allocation9] sm:$0x3] %v1606_v51 }
 0x848   :  { %1822 = shalt.err (!%p1819_p0)
}
 0x849   :  { %1619 = dma.vmem_to_hbm [thread:$0]  %s1617_s1, 32, %s2700_s2, [#allocation6]  }
 0x84a   :  { %1835 = dma.done.wait [#allocation6], 32  }
 0x84b   :  { %1836 = vsyncadd [#allocation6], 4294967264 }
 0x84c   :  { %1623 = vsyncpa [#allocation5], 1 }
 0x84d   :  { %1624 = vsyncpa [#allocation8], 1 }
 0x84e   :  { %1625 = vsyncpa [#allocation6], 1 }

</bundles_post_ra>
